<compile_context>
chip_gen: v7x
topology: tpu7x:2x2x1
jax: 0.10.0
libtpu: 0.0.40
codegen_flags: <defaults>
</compile_context>

<pallas_src>
import math
import functools

import jax
import jax.numpy as jnp
from jax.experimental import pallas as pl
from jax.experimental.pallas import tpu as pltpu


def _round_up(x, m):
    return (x + m - 1) // m * m


def _pad_axis(x, axis, new_size):
    pad = new_size - x.shape[axis]
    if pad == 0:
        return x
    widths = [(0, 0)] * x.ndim
    widths[axis] = (0, pad)
    return jnp.pad(x, widths)


# --------------------------- Pallas kernel ----------------------------------

def _matcher_kernel(bank_len_ref, q_ref, k_ref, v_ref, o_ref,
                    m_sc, l_sc, acc_sc, *, d_key, tbn):
    obj = pl.program_id(0)
    b = pl.program_id(2)
    nb = pl.num_programs(2)
    blen = bank_len_ref[obj]                      # valid bank entries (SMEM)

    @pl.when(b == 0)
    def _():
        m_sc[...] = jnp.full_like(m_sc, -jnp.inf)
        l_sc[...] = jnp.zeros_like(l_sc)
        acc_sc[...] = jnp.zeros_like(acc_sc)

    # Skip bank tiles that lie entirely beyond this object's valid length.
    @pl.when(b * tbn < blen)
    def _():
        # scores: (TM, TBN) = q (TM, DK) @ k (DK, TBN); bf16 in, f32 acc (MXU)
        s = jnp.dot(q_ref[...], k_ref[...], preferred_element_type=jnp.float32)
        s = s * (1.0 / math.sqrt(d_key))

        # mask padded / invalid bank columns of this tile
        col = jax.lax.broadcasted_iota(jnp.int32, s.shape, 1) + b * tbn
        s = jnp.where(col < blen, s, -jnp.inf)

        # online softmax over the bank (lane) axis
        m_new = jnp.maximum(m_sc[...], jnp.max(s, axis=-1, keepdims=True))
        alpha = jnp.exp(m_sc[...] - m_new)
        e = jnp.exp(s - m_new)
        l_sc[...] = alpha * l_sc[...] + jnp.sum(e, axis=-1, keepdims=True)
        # mem^T contribution: (TM, DV) = e (TM, TBN) @ v^T (TBN, DV)
        acc_sc[...] = alpha * acc_sc[...] + jnp.dot(
            e.astype(v_ref.dtype), v_ref[...], preferred_element_type=jnp.float32)
        m_sc[...] = m_new

    @pl.when(b == nb - 1)
    def _():
        o_ref[...] = acc_sc[...] * pl.reciprocal(l_sc[...], approx=True)


# --------------------------- wrapper -----------------------------------------

def matcher_forward(keys, values, bank_lens, q_in, q_out, *, tm=256, tbn=512):
    """Matcher.forward (update_bank=False).

    keys:      (obj_n, d_key, max_bank)   stacked feature_bank.keys (padded)
    values:    (obj_n, d_val, max_bank)   stacked feature_bank.values (padded)
    bank_lens: (obj_n,) int32             valid bank entries per object
    q_in:      (bs, d_key, hw)
    q_out:     (bs, d_out, hw)
    returns    (bs, obj_n, d_val + d_out, hw)  float32
    """
    obj_n, d_key, max_bank = keys.shape
    d_val = values.shape[1]
    bs, d_key_q, hw = q_in.shape
    assert d_key_q == d_key
    M = bs * hw

    tm = min(tm, _round_up(M, 8))
    Mp = _round_up(M, tm)
    DKp = _round_up(d_key, 128)
    DVp = _round_up(d_val, 128)
    tbn = min(tbn, _round_up(max_bank, 128))
    BNp = _round_up(max_bank, tbn)

    # queries as (bs*hw, d_key), bf16, channels on the lane axis
    q_t = jnp.transpose(q_in, (0, 2, 1)).reshape(M, d_key).astype(jnp.bfloat16)
    q_t = _pad_axis(_pad_axis(q_t, 0, Mp), 1, DKp)

    # keys: (obj, DKp, BNp) bf16 ; values^T: (obj, BNp, DVp) bf16
    k_p = _pad_axis(_pad_axis(keys.astype(jnp.bfloat16), 1, DKp), 2, BNp)
    v_t = jnp.transpose(values, (0, 2, 1)).astype(jnp.bfloat16)
    v_t = _pad_axis(_pad_axis(v_t, 1, BNp), 2, DVp)

    bank_lens = bank_lens.astype(jnp.int32)
    n_q_tiles = Mp // tm
    n_b_tiles = BNp // tbn

    flops = 2 * obj_n * Mp * BNp * (DKp + DVp)
    bytes_accessed = (obj_n * n_q_tiles * (DKp * BNp + BNp * DVp) * 2
                      + obj_n * Mp * DKp * 2 + obj_n * Mp * DVp * 4)

    mem = pl.pallas_call(
        functools.partial(_matcher_kernel, d_key=d_key, tbn=tbn),
        out_shape=jax.ShapeDtypeStruct((obj_n, Mp, DVp), jnp.float32),
        grid_spec=pltpu.PrefetchScalarGridSpec(
            num_scalar_prefetch=1,
            grid=(obj_n, n_q_tiles, n_b_tiles),
            in_specs=[
                pl.BlockSpec((tm, DKp), lambda i, t, b, bl: (t, 0)),
                pl.BlockSpec((None, DKp, tbn), lambda i, t, b, bl: (i, 0, b)),
                pl.BlockSpec((None, tbn, DVp), lambda i, t, b, bl: (i, b, 0)),
            ],
            out_specs=pl.BlockSpec((None, tm, DVp), lambda i, t, b, bl: (i, t, 0)),
            scratch_shapes=[
                pltpu.VMEM((tm, 1), jnp.float32),    # running max
                pltpu.VMEM((tm, 1), jnp.float32),    # running denom
                pltpu.VMEM((tm, DVp), jnp.float32),  # running numerator
            ],
        ),
        compiler_params=pltpu.CompilerParams(
            dimension_semantics=("parallel", "parallel", "arbitrary")),
        cost_estimate=pl.CostEstimate(
            flops=flops, transcendentals=obj_n * Mp * BNp,
            bytes_accessed=bytes_accessed),
    )(bank_lens, q_t, k_p, v_t)

    mem = mem[:, :M, :d_val].reshape(obj_n, bs, hw, d_val)
    mem = jnp.transpose(mem, (1, 0, 3, 2))            # (bs, obj_n, d_val, hw)

    q_out_b = jnp.broadcast_to(q_out.astype(jnp.float32)[:, None],
                               (bs, obj_n) + q_out.shape[1:])
    return jnp.concatenate([mem, q_out_b], axis=2)    # (bs, obj_n, d_val+d_out, hw)


# --------------------------- pure-JAX reference -------------------------------

def matcher_reference(keys, values, bank_lens, q_in, q_out):
    obj_n, d_key, _ = keys.shape
    kf = keys.astype(jnp.bfloat16).astype(jnp.float32)
    vf = values.astype(jnp.bfloat16).astype(jnp.float32)
    qf = q_in.astype(jnp.bfloat16).astype(jnp.float32)
    outs = []
    for i in range(obj_n):
        n = int(bank_lens[i])
        k = kf[i, :, :n]                              # (d_key, n)
        v = vf[i, :, :n]                              # (d_val, n)
        p = jnp.einsum('kn,bkq->bnq', k, qf) / math.sqrt(d_key)
        p = jax.nn.softmax(p, axis=1)
        mem = jnp.einsum('vn,bnq->bvq', v, p)
        outs.append(jnp.concatenate([mem, q_out.astype(jnp.float32)], axis=1))
    return jnp.transpose(jnp.stack(outs, axis=0), (1, 0, 2, 3))


# --------------------------- demo ---------------------------------------------

if __name__ == "__main__":
    key = jax.random.PRNGKey(0)
    kk, kv, kq, ko = jax.random.split(key, 4)

    obj_n, bs, d_key, d_val, d_out, h, w = 3, 1, 64, 96, 32, 16, 16
    hw = h * w
    max_bank = 640
    # exercises: partially-valid tiles, fully-valid tiles and fully-masked
    # (skipped) bank tiles of the online-softmax path
    bank_lens = jnp.array([130, 640, 500], jnp.int32)

    keys = jax.random.normal(kk, (obj_n, d_key, max_bank), jnp.float32)
    values = jax.random.normal(kv, (obj_n, d_val, max_bank), jnp.float32)
    q_in = jax.random.normal(kq, (bs, d_key, hw), jnp.float32)
    q_out = jax.random.normal(ko, (bs, d_out, hw), jnp.float32)

    fwd = jax.jit(functools.partial(matcher_forward, tm=128, tbn=256))
    out = fwd(keys, values, bank_lens, q_in, q_out)
    jax.block_until_ready(out)

    assert out.shape == (bs, obj_n, d_val + d_out, hw), out.shape
    assert bool(jnp.all(jnp.isfinite(out)))

    ref = matcher_reference(keys, values, bank_lens, q_in, q_out)
    max_err = float(jnp.max(jnp.abs(out - ref)))
    assert max_err < 2e-2, f"max abs err {max_err}"
    print("KERNEL_OK")
</pallas_src>

<mosaic_0001>
module attributes {stable_mosaic.version = 11 : i64} {
  func.func @_matcher_kernel(%arg0: i32, %arg1: i32, %arg2: i32, %arg3: memref<3xi32, #tpu.memory_space<smem>>, %arg4: memref<128x128xbf16, #tpu.memory_space<vmem>>, %arg5: memref<1x128x256xbf16, #tpu.memory_space<vmem>>, %arg6: memref<1x256x128xbf16, #tpu.memory_space<vmem>>, %arg7: memref<1x128x128xf32, #tpu.memory_space<vmem>>, %arg8: memref<128x1xf32, #tpu.memory_space<vmem>>, %arg9: memref<128x1xf32, #tpu.memory_space<vmem>>, %arg10: memref<128x128xf32, #tpu.memory_space<vmem>>) attributes {dimension_semantics = [#tpu.dimension_semantics<parallel>, #tpu.dimension_semantics<parallel>, #tpu.dimension_semantics<arbitrary>], iteration_bounds = array<i64: 3, 2, 3>, scalar_prefetch = 1 : i64, scratch_operands = 3 : i64, tpu.core_type = #tpu.core_type<tc>, window_params = [{transform_indices = @transform_0, window_bounds = array<i64: 128, 128>}, {transform_indices = @transform_1, window_bounds = array<i64: 1, 128, 256>}, {transform_indices = @transform_2, window_bounds = array<i64: 1, 256, 128>}, {transform_indices = @transform_3, window_bounds = array<i64: 1, 128, 128>}]} {
    %0 = arith.index_cast %arg0 : i32 to index
    %1 = memref.load %arg3[%0] : memref<3xi32, #tpu.memory_space<smem>>
    %c0_i32 = arith.constant 0 : i32
    %2 = arith.cmpi eq, %arg2, %c0_i32 : i32
    %3 = arith.extui %2 : i1 to i32
    %c0_i32_0 = arith.constant 0 : i32
    %4 = arith.cmpi ne, %3, %c0_i32_0 : i32
    scf.if %4 {
      %cst = arith.constant 0xFF800000 : f32
      %12 = vector.broadcast %cst : f32 to vector<128x1xf32>
      %c0 = arith.constant 0 : index
      %c0_3 = arith.constant 0 : index
      %13 = vector.load %arg8[%c0, %c0_3] : memref<128x1xf32, #tpu.memory_space<vmem>>, vector<128x1xf32>
      tpu.vector_store %arg8[%c0, %c0_3], %12 {strides = array<i32>} : memref<128x1xf32, #tpu.memory_space<vmem>>, vector<128x1xf32>,
      %cst_4 = arith.constant 0.000000e+00 : f32
      %14 = vector.broadcast %cst_4 : f32 to vector<128x1xf32>
      %c0_5 = arith.constant 0 : index
      %c0_6 = arith.constant 0 : index
      %15 = vector.load %arg9[%c0_5, %c0_6] : memref<128x1xf32, #tpu.memory_space<vmem>>, vector<128x1xf32>
      tpu.vector_store %arg9[%c0_5, %c0_6], %14 {strides = array<i32>} : memref<128x1xf32, #tpu.memory_space<vmem>>, vector<128x1xf32>,
      %cst_7 = arith.constant 0.000000e+00 : f32
      %16 = vector.broadcast %cst_7 : f32 to vector<128x128xf32>
      %c0_8 = arith.constant 0 : index
      %c0_9 = arith.constant 0 : index
      %17 = vector.load %arg10[%c0_8, %c0_9] : memref<128x128xf32, #tpu.memory_space<vmem>>, vector<128x128xf32>
      tpu.vector_store %arg10[%c0_8, %c0_9], %16 {strides = array<i32>} : memref<128x128xf32, #tpu.memory_space<vmem>>, vector<128x128xf32>,
    } else {
    }
    %c256_i32 = arith.constant 256 : i32
    %5 = arith.muli %arg2, %c256_i32 : i32
    %6 = arith.cmpi slt, %5, %1 : i32
    %7 = arith.extui %6 : i1 to i32
    %c0_i32_1 = arith.constant 0 : i32
    %8 = arith.cmpi ne, %7, %c0_i32_1 : i32
    scf.if %8 {
      %c0 = arith.constant 0 : index
      %c0_3 = arith.constant 0 : index
      %12 = vector.load %arg4[%c0, %c0_3] : memref<128x128xbf16, #tpu.memory_space<vmem>>, vector<128x128xbf16>
      %c0_4 = arith.constant 0 : index
      %c0_5 = arith.constant 0 : index
      %c0_6 = arith.constant 0 : index
      %13 = vector.load %arg5[%c0_4, %c0_5, %c0_6] : memref<1x128x256xbf16, #tpu.memory_space<vmem>>, vector<1x128x256xbf16>
      %14 = vector.shape_cast %13 : vector<1x128x256xbf16> to vector<128x256xbf16>
      %cst = arith.constant dense<0.000000e+00> : vector<128x256xf32>
      %15 = tpu.matmul %12, %14, %cst {dimension_numbers = #tpu.dot_dimension_numbers<[1], [0], [0], [1], [0, 0, 1, 1], [], []>} : vector<128x128xbf16>, vector<128x256xbf16>, vector<128x256xf32> -> vector<128x256xf32>
      %cst_7 = arith.constant 1.250000e-01 : f32
      %16 = vector.broadcast %cst_7 : f32 to vector<128x256xf32>
      %17 = arith.mulf %15, %16 : vector<128x256xf32>
      %18 = tpu.iota {dimensions = array<i32: 1>} : vector<128x256xi32>
      %c256_i32_8 = arith.constant 256 : i32
      %19 = arith.muli %arg2, %c256_i32_8 : i32
      %20 = vector.broadcast %19 : i32 to vector<128x256xi32>
      %21 = arith.addi %18, %20 : vector<128x256xi32>
      %22 = vector.broadcast %1 : i32 to vector<128x256xi32>
      %23 = arith.cmpi slt, %21, %22 : vector<128x256xi32>
      %cst_9 = arith.constant 0xFF800000 : f32
      %24 = vector.broadcast %cst_9 : f32 to vector<128x256xf32>
      %25 = arith.select %23, %17, %24 : vector<128x256xi1>, vector<128x256xf32>
      %c0_10 = arith.constant 0 : index
      %c0_11 = arith.constant 0 : index
      %26 = vector.load %arg8[%c0_10, %c0_11] : memref<128x1xf32, #tpu.memory_space<vmem>>, vector<128x1xf32>
      %cst_12 = arith.constant dense<0xFF800000> : vector<128xf32>
      %27 = vector.multi_reduction <maximumf>, %25, %cst_12 [1] : vector<128x256xf32> to vector<128xf32>
      %28 = vector.shape_cast %27 : vector<128xf32> to vector<128x1xf32>
      %29 = arith.maximumf %26, %28 : vector<128x1xf32>
      %c0_13 = arith.constant 0 : index
      %c0_14 = arith.constant 0 : index
      %30 = vector.load %arg8[%c0_13, %c0_14] : memref<128x1xf32, #tpu.memory_space<vmem>>, vector<128x1xf32>
      %31 = arith.subf %30, %29 : vector<128x1xf32>
      %32 = math.exp %31 : vector<128x1xf32>
      %33 = vector.broadcast %29 : vector<128x1xf32> to vector<128x256xf32>
      %34 = arith.subf %25, %33 : vector<128x256xf32>
      %35 = math.exp %34 : vector<128x256xf32>
      %c0_15 = arith.constant 0 : index
      %c0_16 = arith.constant 0 : index
      %36 = vector.load %arg9[%c0_15, %c0_16] : memref<128x1xf32, #tpu.memory_space<vmem>>, vector<128x1xf32>
      %37 = arith.mulf %32, %36 : vector<128x1xf32>
      %cst_17 = arith.constant dense<0.000000e+00> : vector<128xf32>
      %38 = vector.multi_reduction <add>, %35, %cst_17 [1] : vector<128x256xf32> to vector<128xf32>
      %39 = vector.shape_cast %38 : vector<128xf32> to vector<128x1xf32>
      %40 = arith.addf %37, %39 : vector<128x1xf32>
      %c0_18 = arith.constant 0 : index
      %c0_19 = arith.constant 0 : index
      %41 = vector.load %arg9[%c0_18, %c0_19] : memref<128x1xf32, #tpu.memory_space<vmem>>, vector<128x1xf32>
      tpu.vector_store %arg9[%c0_18, %c0_19], %40 {strides = array<i32>} : memref<128x1xf32, #tpu.memory_space<vmem>>, vector<128x1xf32>,
      %c0_20 = arith.constant 0 : index
      %c0_21 = arith.constant 0 : index
      %42 = vector.load %arg10[%c0_20, %c0_21] : memref<128x128xf32, #tpu.memory_space<vmem>>, vector<128x128xf32>
      %43 = vector.broadcast %32 : vector<128x1xf32> to vector<128x128xf32>
      %44 = arith.mulf %43, %42 : vector<128x128xf32>
      %45 = arith.truncf %35 : vector<128x256xf32> to vector<128x256xbf16>
      %c0_22 = arith.constant 0 : index
      %c0_23 = arith.constant 0 : index
      %c0_24 = arith.constant 0 : index
      %46 = vector.load %arg6[%c0_22, %c0_23, %c0_24] : memref<1x256x128xbf16, #tpu.memory_space<vmem>>, vector<1x256x128xbf16>
      %47 = vector.shape_cast %46 : vector<1x256x128xbf16> to vector<256x128xbf16>
      %cst_25 = arith.constant dense<0.000000e+00> : vector<128x128xf32>
      %48 = tpu.matmul %45, %47, %cst_25 {dimension_numbers = #tpu.dot_dimension_numbers<[1], [0], [0], [1], [0, 0, 1, 1], [], []>} : vector<128x256xbf16>, vector<256x128xbf16>, vector<128x128xf32> -> vector<128x128xf32>
      %49 = arith.addf %44, %48 : vector<128x128xf32>
      %c0_26 = arith.constant 0 : index
      %c0_27 = arith.constant 0 : index
      %50 = vector.load %arg10[%c0_26, %c0_27] : memref<128x128xf32, #tpu.memory_space<vmem>>, vector<128x128xf32>
      tpu.vector_store %arg10[%c0_26, %c0_27], %49 {strides = array<i32>} : memref<128x128xf32, #tpu.memory_space<vmem>>, vector<128x128xf32>,
      %c0_28 = arith.constant 0 : index
      %c0_29 = arith.constant 0 : index
      %51 = vector.load %arg8[%c0_28, %c0_29] : memref<128x1xf32, #tpu.memory_space<vmem>>, vector<128x1xf32>
      tpu.vector_store %arg8[%c0_28, %c0_29], %29 {strides = array<i32>} : memref<128x1xf32, #tpu.memory_space<vmem>>, vector<128x1xf32>,
    } else {
    }
    %c2_i32 = arith.constant 2 : i32
    %9 = arith.cmpi eq, %arg2, %c2_i32 : i32
    %10 = arith.extui %9 : i1 to i32
    %c0_i32_2 = arith.constant 0 : i32
    %11 = arith.cmpi ne, %10, %c0_i32_2 : i32
    scf.if %11 {
      %c0 = arith.constant 0 : index
      %c0_3 = arith.constant 0 : index
      %12 = vector.load %arg10[%c0, %c0_3] : memref<128x128xf32, #tpu.memory_space<vmem>>, vector<128x128xf32>
      %c0_4 = arith.constant 0 : index
      %c0_5 = arith.constant 0 : index
      %13 = vector.load %arg9[%c0_4, %c0_5] : memref<128x1xf32, #tpu.memory_space<vmem>>, vector<128x1xf32>
      %14 = tpu.reciprocal %13 {approx = true} : vector<128x1xf32> -> vector<128x1xf32>
      %15 = vector.broadcast %14 : vector<128x1xf32> to vector<128x128xf32>
      %16 = arith.mulf %12, %15 : vector<128x128xf32>
      %c0_6 = arith.constant 0 : index
      %c0_7 = arith.constant 0 : index
      %c0_8 = arith.constant 0 : index
      %17 = vector.load %arg7[%c0_6, %c0_7, %c0_8] : memref<1x128x128xf32, #tpu.memory_space<vmem>>, vector<1x128x128xf32>
      %18 = vector.shape_cast %17 : vector<1x128x128xf32> to vector<128x128xf32>
      %19 = vector.shape_cast %16 : vector<128x128xf32> to vector<1x128x128xf32>
      tpu.vector_store %arg7[%c0_6, %c0_7, %c0_8], %19 {strides = array<i32>} : memref<1x128x128xf32, #tpu.memory_space<vmem>>, vector<1x128x128xf32>,
    } else {
    }
    return
  }
  func.func @transform_0(%arg0: i32, %arg1: i32, %arg2: i32, %arg3: memref<3xi32, #tpu.memory_space<smem>>) -> (i32, i32) {
    %c0_i32 = arith.constant 0 : i32
    %c0_i32_0 = arith.constant 0 : i32
    return %arg1, %c0_i32 : i32, i32
  }
  func.func @transform_1(%arg0: i32, %arg1: i32, %arg2: i32, %arg3: memref<3xi32, #tpu.memory_space<smem>>) -> (i32, i32, i32) {
    %c0_i32 = arith.constant 0 : i32
    %c0_i32_0 = arith.constant 0 : i32
    return %arg0, %c0_i32, %arg2 : i32, i32, i32
  }
  func.func @transform_2(%arg0: i32, %arg1: i32, %arg2: i32, %arg3: memref<3xi32, #tpu.memory_space<smem>>) -> (i32, i32, i32) {
    %c0_i32 = arith.constant 0 : i32
    %c0_i32_0 = arith.constant 0 : i32
    return %arg0, %arg2, %c0_i32 : i32, i32, i32
  }
  func.func @transform_3(%arg0: i32, %arg1: i32, %arg2: i32, %arg3: memref<3xi32, #tpu.memory_space<smem>>) -> (i32, i32, i32) {
    %c0_i32 = arith.constant 0 : i32
    %c0_i32_0 = arith.constant 0 : i32
    return %arg0, %arg1, %c0_i32 : i32, i32, i32
  }
}

</mosaic_0001>

<bundles_post_ra>
// kernel: matcher_forward.1
= control target key start
LH: loop header
LB: loop body
LE: loop exit
PB: predicated region body
PF: predicated region fallthrough
CT: control target
= control target key end

     0   :  { %s3113_s0 = inlined_call_operand.vmem [shape: s32[3], index: 0, kind: input, shape index: {}]   ;;  %s3114_s1 = inlined_call_operand.vmem [shape: bf16[256,128], index: 1, kind: input, shape index: {}]   ;;  %s3115_s2 = inlined_call_operand.vmem [shape: bf16[3,128,768], index: 2, kind: input, shape index: {}]   ;;  %s3116_s3 = inlined_call_operand.vmem [shape: bf16[3,768,128], index: 3, kind: input, shape index: {}]   ;;  %s3117_s4 = inlined_call_operand.vmem [shape: f32[3,256,128], index: 4, kind: output, shape index: {}]  }
   0x1   :  { %3121 = sst [smem:[#allocation13_spill]] %s3115_s2  ;;  %s9_s17 = sshll.u32 %s3113_s0, 4  ;;  %s10_s17 = int_to_ptr.vmem [resolvable:$true] %s9_s17 }
   0x2   :  { %s2268_s18 = scalar_lea.vmem %s10_s17, 16  ;;  %p2273_p1 = scmp.lt.s32.totalorder %s10_s17, %s10_s17 }
   0x3   :  { %p2269_p0 = scmp.ne.s32.totalorder %s10_s17, %s2268_s18  ;;  %p2274_p2 = scmp.lt.s32.totalorder %s2268_s18, %s2268_s18 }
   0x5   :  { %p2275_p3 = por %p2274_p2, %p2273_p1 }
   0x7   :  { %p2276_p4 = pnand %p2275_p3, %p2269_p0 }
   0x9   :  { %2279 = shalt.err (!%p2276_p4)  }
   0xa   :  { %s2354_s19 = smov [#allocation6]  }
   0xb   :  { %12 = dma.vmem_to_smem %s10_s17, 16, %s2354_s19, [#allocation5] }
   0xc   :  { %2316 = dma.done.wait [#allocation5], 16 }
   0xd   :  { %2317 = vsyncadd [#allocation5], 4294967280 }
   0xe   :  { %14 = sfence }
   0xf   :  { %s2387_s20 = smov 0   ;;  %s2389_s21 = smov 0  }
  0x10   :  { %s2391_s22 = smov 0   ;;  %s2393_s0 = smov 0  }
  0x11   :  { %s2395_s23 = smov 0   ;;  %s2397_s24 = smov 0  }
  0x12   :  { %s2399_s25 = smov 0   ;;  %s2401_s26 = smov 0  }
  0x13   :  { %s2403_s27 = smov 0  }
  0x14 LB: > { %s32_s28 = sadd.s32 1, %s2340_s24  ;;  %s35_s29 = sadd.s32 1, %s2344_s25  ;;  %s2352_s27 = sphi %s2403_s27, %s20_s27   ;;  %s2348_s26 = sphi %s2401_s26, %s3142_s26   ;;  %s2344_s25 = sphi %s2399_s25, %s3141_s25   ;;  %s2340_s24 = sphi %s2397_s24, %s3140_s24   ;;  %s2336_s23 = sphi %s2395_s23, %s3139_s23   ;;  %s2332_s0 = sphi %s2393_s0, %s3138_s0   ;;  %s2328_s22 = sphi %s2391_s22, %s3137_s22   ;;  %s2324_s21 = sphi %s2389_s21, %s3136_s21   ;;  %s2320_s20 = sphi %s2387_s20, %s3135_s20  }
  0x15   : > { %p33_p5 = scmp.ge.s32.totalorder %s32_s28, 3  ;;  %p81_p6 = scmp.ne.s32.totalorder %s2324_s21, %s2320_s20 }
  0x16   : > { %p82_p7 = scmp.eq.s32.totalorder %s2352_s27, 0  ;;  %s39_s30 = sadd.s32 1, %s2348_s26 }
  0x17   : > { %s3144_s28 = smov (%p33_p5, %s32_s28), 0  ;;  %s3146_s29 = smov (!%p33_p5, %s35_s29), %s2344_s25 }
  0x18   : > { %3122 = sst [smem:[#allocation9_spill]] %s3144_s28  ;;  %p37_p8 = scmp.ge.s32.totalorder %s3146_s29, 2 }
  0x19   : > { %p83_p9 = por %p82_p7, %p81_p6  ;;  %s70_s5 = ssub.s32 %s2340_s24, %s3144_s28 }
  0x1a   : > { %s3148_s29 = smov (%p37_p8, %s3146_s29), 0  ;;  %s3150_s30 = smov (!%p37_p8, %s39_s30), %s2348_s26 }
  0x1b   : > { %3123 = sst [smem:[#allocation10_spill]] %s3148_s29  ;;  %p41_p10 = scmp.ge.s32.totalorder %s3150_s30, 3 }
  0x1c   : > { %s74_s8 = sadd.s32 1, %s2324_s21  ;;  %p1886_p12 = scmp.ge.s32.totalorder %s2352_s27, 18 }
  0x1d   : > { %s3152_s30 = smov (%p41_p10, %s3150_s30), 0 }
  0x1e   : > { %3124 = sst [smem:[#allocation11_spill]] %s3152_s30  ;;  %s69_s6 = ssub.s32 %s2348_s26, %s3152_s30 }
  0x1f   : > { %s71_s7 = sor.u32 %s70_s5, %s69_s6  ;;  %163 = sbr.rel (%p1886_p12) target bundleno = 56 (0x38), region = 16 }
  0x20   : > { %p72_p11 = scmp.eq.s32.totalorder %s71_s7, 0 }
  0x22   : > { %s2452_s9 = scalar_select %p72_p11, %s2324_s21, %s74_s8  }
  0x26   : > { %175 = sbr.rel (!%p83_p9) target bundleno = 56 (0x38), region = 24  ;;  %s177_s10 = sand.u32 (%p83_p9), 1, %s2324_s21  }
  0x27   : > { %s1888_s11 = sshll.u32 (%p83_p9), %s2340_s24, 1  ;;  %s1887_s12 = sshll.u32 (%p83_p9), %s177_s10, 7 }
  0x28   : > { %s2009_s13 = smul.u32 (%p83_p9), 96, %s2348_s26  ;;  %s3125_s2 = sld [smem:[#allocation13_spill]] (%p83_p9) }
  0x29   : > { %s179_s19 = scalar_lea.vmem (%p83_p9), [#allocation7], %s1887_s12 }
  0x2a   : > { %s182_s14 = sadd.s32 (%p83_p9), %s2009_s13, %s1888_s11 }
  0x2b   : > { %s1889_s15 = sshll.u32 (%p83_p9), %s182_s14, 2 }
  0x2e   : > { %s2461_s18 = scalar_lea.vmem %s3125_s2, %s1889_s15 }
  0x2f   : > { %v242_v0 = vld [vmem:[%s2461_s18] sm:$0xff]  ;;  %v244_v1 = vld [vmem:[%s2461_s18 + $0x18] sm:$0xff]  ;;  %v246_v2 = vld [vmem:[%s2461_s18 + $0x30] sm:$0xff] }
  0x30   : > { %243 = vst [vmem:[%s179_s19] sm:$0xff] %v242_v0  ;;  %245 = vst [vmem:[%s179_s19 + $0x8] sm:$0xff] %v244_v1  ;;  %v248_v3 = vld [vmem:[%s2461_s18 + $0x48] sm:$0xff]  ;;  %v250_v4 = vld [vmem:[%s2461_s18 + $0x60] sm:$0xff] }
  0x31   : > { %247 = vst [vmem:[%s179_s19 + $0x10] sm:$0xff] %v246_v2  ;;  %v252_v5 = vld [vmem:[%s2461_s18 + $0x78] sm:$0xff]  ;;  %249 = vst [vmem:[%s179_s19 + $0x18] sm:$0xff] %v248_v3  ;;  %v254_v6 = vld [vmem:[%s2461_s18 + $0x90] sm:$0xff] }
  0x32   : > { %251 = vst [vmem:[%s179_s19 + $0x20] sm:$0xff] %v250_v4  ;;  %253 = vst [vmem:[%s179_s19 + $0x28] sm:$0xff] %v252_v5  ;;  %v256_v7 = vld [vmem:[%s2461_s18 + $0xa8] sm:$0xff]  ;;  %v258_v8 = vld [vmem:[%s2461_s18 + $0xc0] sm:$0xff] }
  0x33   : > { %255 = vst [vmem:[%s179_s19 + $0x30] sm:$0xff] %v254_v6  ;;  %257 = vst [vmem:[%s179_s19 + $0x38] sm:$0xff] %v256_v7  ;;  %v260_v9 = vld [vmem:[%s2461_s18 + $0xd8] sm:$0xff]  ;;  %v262_v10 = vld [vmem:[%s2461_s18 + $0xf0] sm:$0xff] }
  0x34   : > { %259 = vst [vmem:[%s179_s19 + $0x40] sm:$0xff] %v258_v8  ;;  %v264_v11 = vld [vmem:[%s2461_s18 + $0x108] sm:$0xff]  ;;  %261 = vst [vmem:[%s179_s19 + $0x48] sm:$0xff] %v260_v9  ;;  %v266_v12 = vld [vmem:[%s2461_s18 + $0x120] sm:$0xff] }
  0x35   : > { %263 = vst [vmem:[%s179_s19 + $0x50] sm:$0xff] %v262_v10  ;;  %265 = vst [vmem:[%s179_s19 + $0x58] sm:$0xff] %v264_v11  ;;  %v268_v13 = vld [vmem:[%s2461_s18 + $0x138] sm:$0xff]  ;;  %v270_v14 = vld [vmem:[%s2461_s18 + $0x150] sm:$0xff] }
  0x36   : > { %267 = vst [vmem:[%s179_s19 + $0x60] sm:$0xff] %v266_v12  ;;  %269 = vst [vmem:[%s179_s19 + $0x68] sm:$0xff] %v268_v13  ;;  %v272_v15 = vld [vmem:[%s2461_s18 + $0x168] sm:$0xff] }
  0x37   : > { %271 = vst [vmem:[%s179_s19 + $0x70] sm:$0xff] %v270_v14  ;;  %273 = vst [vmem:[%s179_s19 + $0x78] sm:$0xff] %v272_v15 }
  0x38 PF: > { %p1890_p13 = scmp.ge.s32.totalorder %s2352_s27, 1  ;;  %p291_p0 = scmp.lt.s32.totalorder %s2352_s27, 19 }
  0x3a   : > { %p292_p1 = pnand %p1890_p13, %p291_p0 }
  0x3b   : > { %s298_s5 = sand.u32 (!%p292_p1), 1, %s2320_s20   ;;  %s1892_s6 = sshll.u32 (!%p292_p1), %s2332_s0, 4 }
  0x3c   : > { %295 = sbr.rel (%p292_p1) target bundleno = 1099 (0x44b), region = 66  ;;  %s1891_s7 = sshll.u32 (!%p292_p1), %s298_s5, 7 }
  0x3d   : > { %p340_p2 = scmp.lt.s32.totalorder (!%p292_p1), %s1892_s6, 31  ;;  %s1894_s8 = sshll.u32 (!%p292_p1), %s2328_s22, 5 }
  0x3e   : > { %p347_p3 = scmp.lt.s32.totalorder (!%p292_p1), %s2336_s23, 2  ;;  %p349_p4 = scmp.lt.s32.totalorder (!%p292_p1), %s1894_s8, 95 }
  0x3f   : > { %s2486_s11 = sld [smem:[#allocation6 + %s2336_s23]] (!%p292_p1)  ;;  %p1899_p5 = scmp.ne.s32.totalorder (!%p292_p1), %s2328_s22, 0 }
  0x43   : > { %s3154_s6 = smov (!%p340_p2, %s1892_s6), 31  ;;  %s3156_s23 = smov (!%p347_p3, %s2336_s23), 2 }
  0x44   : > { %s1893_s10 = sshll.u32 %s3154_s6, 2  ;;  %s3158_s8 = smov (!%p349_p4, %s1894_s8), 95  ;;  %vm372_vm0 = vcmask (!%p1899_p5), 7168   ;;  %v2355_v16 = vmov (!%p1899_p5), -inf   ;;  %v2356_v17 = vmov (!%p1899_p5), 0.0  }
  0x45   : > { %s2491_s14 = scalar_lea.vmem %s3114_s1, %s1893_s10  ;;  %s2010_s15 = smul.u32 96, %s3156_s23  ;;  %373 = vst.msk [vmem:[#allocation2] sm:$0xff] (!%p1899_p5), %vm372_vm0, %v2355_v16  ;;  %374 = vst.msk [vmem:[#allocation2 + $0x8] sm:$0xff] (!%p1899_p5), %vm372_vm0, %v2355_v16 }
  0x46   : > { %s1897_s16 = sshll.u32 %s3156_s23, 5  ;;  %s2504_s10 = scalar_lea.vmem [#allocation7], %s1891_s7  ;;  %375 = vst.msk [vmem:[#allocation2 + $0x10] sm:$0xff] (!%p1899_p5), %vm372_vm0, %v2355_v16  ;;  %376 = vst.msk [vmem:[#allocation2 + $0x18] sm:$0xff] (!%p1899_p5), %vm372_vm0, %v2355_v16 }
  0x47   : > { %s362_s20 = sadd.s32 %s1897_s16, %s3154_s6  ;;  %s352_s0 = sadd.s32 %s2010_s15, %s3158_s8  ;;  %377 = vst.msk [vmem:[#allocation2 + $0x20] sm:$0xff] (!%p1899_p5), %vm372_vm0, %v2355_v16  ;;  %378 = vst.msk [vmem:[#allocation2 + $0x28] sm:$0xff] (!%p1899_p5), %vm372_vm0, %v2355_v16 }
  0x48   : > { %s1898_s17 = sshll.u32 %s362_s20, 3  ;;  %s1895_s18 = sshll.u32 %s352_s0, 2  ;;  %379 = vst.msk [vmem:[#allocation2 + $0x30] sm:$0xff] (!%p1899_p5), %vm372_vm0, %v2355_v16  ;;  %380 = vst.msk [vmem:[#allocation2 + $0x38] sm:$0xff] (!%p1899_p5), %vm372_vm0, %v2355_v16 }
  0x49   : > { %s2497_s2 = scalar_lea.vmem %s3117_s4, %s1898_s17  ;;  %s2502_s28 = scalar_lea.vmem %s3116_s3, %s1895_s18  ;;  %381 = vst.msk [vmem:[#allocation2 + $0x40] sm:$0xff] (!%p1899_p5), %vm372_vm0, %v2355_v16  ;;  %382 = vst.msk [vmem:[#allocation2 + $0x48] sm:$0xff] (!%p1899_p5), %vm372_vm0, %v2355_v16 }
  0x4a   : > { %371 = sbr.rel (%p1899_p5) target bundleno = 93 (0x5d), region = 74  ;;  %383 = vst.msk [vmem:[#allocation2 + $0x50] sm:$0xff] (!%p1899_p5), %vm372_vm0, %v2355_v16  ;;  %384 = vst.msk [vmem:[#allocation2 + $0x58] sm:$0xff] (!%p1899_p5), %vm372_vm0, %v2355_v16 }
  0x4b   : > { %385 = vst.msk [vmem:[#allocation2 + $0x60] sm:$0xff] (!%p1899_p5), %vm372_vm0, %v2355_v16  ;;  %386 = vst.msk [vmem:[#allocation2 + $0x68] sm:$0xff] (!%p1899_p5), %vm372_vm0, %v2355_v16 }
  0x4c   : > { %387 = vst.msk [vmem:[#allocation2 + $0x70] sm:$0xff] (!%p1899_p5), %vm372_vm0, %v2355_v16  ;;  %388 = vst.msk [vmem:[#allocation2 + $0x78] sm:$0xff] (!%p1899_p5), %vm372_vm0, %v2355_v16 }
  0x4d   : > { %389 = vst.msk [vmem:[#allocation3] sm:$0xff] (!%p1899_p5), %vm372_vm0, %v2356_v17  ;;  %390 = vst.msk [vmem:[#allocation3 + $0x8] sm:$0xff] (!%p1899_p5), %vm372_vm0, %v2356_v17 }
  0x4e   : > { %391 = vst.msk [vmem:[#allocation3 + $0x10] sm:$0xff] (!%p1899_p5), %vm372_vm0, %v2356_v17  ;;  %392 = vst.msk [vmem:[#allocation3 + $0x18] sm:$0xff] (!%p1899_p5), %vm372_vm0, %v2356_v17 }
  0x4f   : > { %393 = vst.msk [vmem:[#allocation3 + $0x20] sm:$0xff] (!%p1899_p5), %vm372_vm0, %v2356_v17  ;;  %394 = vst.msk [vmem:[#allocation3 + $0x28] sm:$0xff] (!%p1899_p5), %vm372_vm0, %v2356_v17 }
  0x50   : > { %395 = vst.msk [vmem:[#allocation3 + $0x30] sm:$0xff] (!%p1899_p5), %vm372_vm0, %v2356_v17  ;;  %396 = vst.msk [vmem:[#allocation3 + $0x38] sm:$0xff] (!%p1899_p5), %vm372_vm0, %v2356_v17 }
  0x51   : > { %397 = vst.msk [vmem:[#allocation3 + $0x40] sm:$0xff] %vm372_vm0, %v2356_v17  ;;  %398 = vst.msk [vmem:[#allocation3 + $0x48] sm:$0xff] %vm372_vm0, %v2356_v17 }
  0x52   : > { %399 = vst.msk [vmem:[#allocation3 + $0x50] sm:$0xff] %vm372_vm0, %v2356_v17  ;;  %400 = vst.msk [vmem:[#allocation3 + $0x58] sm:$0xff] %vm372_vm0, %v2356_v17 }
  0x53   : > { %401 = vst.msk [vmem:[#allocation3 + $0x60] sm:$0xff] %vm372_vm0, %v2356_v17  ;;  %402 = vst.msk [vmem:[#allocation3 + $0x68] sm:$0xff] %vm372_vm0, %v2356_v17 }
  0x54   : > { %403 = vst.msk [vmem:[#allocation3 + $0x70] sm:$0xff] %vm372_vm0, %v2356_v17  ;;  %404 = vst.msk [vmem:[#allocation3 + $0x78] sm:$0xff] %vm372_vm0, %v2356_v17 }
  0x55   : > { %405 = vst [vmem:[#allocation4] sm:$0xff] %v2356_v17  ;;  %406 = vst [vmem:[#allocation4 + $0x8] sm:$0xff] %v2356_v17 }
  0x56   : > { %407 = vst [vmem:[#allocation4 + $0x10] sm:$0xff] %v2356_v17  ;;  %408 = vst [vmem:[#allocation4 + $0x18] sm:$0xff] %v2356_v17 }
  0x57   : > { %409 = vst [vmem:[#allocation4 + $0x20] sm:$0xff] %v2356_v17  ;;  %410 = vst [vmem:[#allocation4 + $0x28] sm:$0xff] %v2356_v17 }
  0x58   : > { %411 = vst [vmem:[#allocation4 + $0x30] sm:$0xff] %v2356_v17  ;;  %412 = vst [vmem:[#allocation4 + $0x38] sm:$0xff] %v2356_v17 }
  0x59   : > { %413 = vst [vmem:[#allocation4 + $0x40] sm:$0xff] %v2356_v17  ;;  %414 = vst [vmem:[#allocation4 + $0x48] sm:$0xff] %v2356_v17 }
  0x5a   : > { %415 = vst [vmem:[#allocation4 + $0x50] sm:$0xff] %v2356_v17  ;;  %416 = vst [vmem:[#allocation4 + $0x58] sm:$0xff] %v2356_v17 }
  0x5b   : > { %417 = vst [vmem:[#allocation4 + $0x60] sm:$0xff] %v2356_v17  ;;  %418 = vst [vmem:[#allocation4 + $0x68] sm:$0xff] %v2356_v17 }
  0x5c   : > { %419 = vst [vmem:[#allocation4 + $0x70] sm:$0xff] %v2356_v17  ;;  %420 = vst [vmem:[#allocation4 + $0x78] sm:$0xff] %v2356_v17 }
  0x5d PF: > { %s1900_s23 = sshll.u32 %s2328_s22, 8 }
  0x5e   : > { %p1901_p6 = scmp.ge.s32.totalorder %s1900_s23, %s2486_s11 }
  0x60   : > { %425 = sbr.rel (%p1901_p6) target bundleno = 926 (0x39e), region = 78 }
  0x67   : > { %v2090_v18 = vld [vmem:[%s2504_s10 + $0x4] ss:$8 sps:$4 sm:$0xff]   ;;  %v2092_v19 = vld [vmem:[%s2504_s10] ss:$8 sps:$4 sm:$0xff]   ;;  %v2357_v20 = vmov 0   ;;  %v2116_v37 = vld [vmem:[%s2491_s14 + $0x10] sm:$0xff]   ;;  %v731_v43 = vlaneseq  ;;  %v734_v46 = vstv %s1900_s23 }
  0x68   : > { %618 = vmatprep.mubr.bf16.mxu0 %v2357_v20  ;;  %2088 = vset.pattern.permute.xlu0 %v2357_v20  ;;  %v2093_v21 = vld [vmem:[%s2504_s10 + $0x14] ss:$8 sps:$4 sm:$0xff]   ;;  %v2095_v22 = vld [vmem:[%s2504_s10 + $0x10] ss:$8 sps:$4 sm:$0xff]   ;;  %v2096_v23 = vld [vmem:[%s2504_s10 + $0x24] ss:$8 sps:$4 sm:$0xff]   ;;  %v737_v49 = vstv %s2486_s11 }
  0x69   : > { %586 = vmatprep.subr.bf16.mxu0 %v2090_v18  ;;  %2089 = vset.pattern.permute.xlu1 %v2357_v20  ;;  %v2098_v24 = vld [vmem:[%s2504_s10 + $0x20] ss:$8 sps:$4 sm:$0xff]   ;;  %v2099_v25 = vld [vmem:[%s2504_s10 + $0x34] ss:$8 sps:$4 sm:$0xff]   ;;  %v2101_v26 = vld [vmem:[%s2504_s10 + $0x30] ss:$8 sps:$4 sm:$0xff]  }
  0x6a   : > { %587 = vmatpush1.bf16.msra.mxu0 %v2092_v19  ;;  %v2102_v27 = vld [vmem:[%s2504_s10 + $0x44] ss:$8 sps:$4 sm:$0xff]   ;;  %v2104_v28 = vld [vmem:[%s2504_s10 + $0x40] ss:$8 sps:$4 sm:$0xff]   ;;  %v2105_v29 = vld [vmem:[%s2504_s10 + $0x54] ss:$8 sps:$4 sm:$0xff]  }
  0x6b   : > { %588 = vmatprep.subr.bf16.mxu0 %v2093_v21  ;;  %v2107_v30 = vld [vmem:[%s2504_s10 + $0x50] ss:$8 sps:$4 sm:$0xff]   ;;  %v2108_v31 = vld [vmem:[%s2504_s10 + $0x64] ss:$8 sps:$4 sm:$0xff]   ;;  %v2110_v32 = vld [vmem:[%s2504_s10 + $0x60] ss:$8 sps:$4 sm:$0xff]  }
  0x6c   : > { %v2111_v33 = vld [vmem:[%s2504_s10 + $0x74] ss:$8 sps:$4 sm:$0xff]   ;;  %v2113_v34 = vld [vmem:[%s2504_s10 + $0x70] ss:$8 sps:$4 sm:$0xff]   ;;  %v2114_v35 = vld [vmem:[%s2491_s14] sm:$0xff]   ;;  %v732_v44 = vand.u32 127, %v731_v43 }
  0x6d   : > { %v2115_v36 = vld [vmem:[%s2491_s14 + $0x8] sm:$0xff]   ;;  %v2117_v38 = vld [vmem:[%s2491_s14 + $0x18] sm:$0xff]   ;;  %v2118_v39 = vld [vmem:[%s2491_s14 + $0x20] sm:$0xff]   ;;  %vm1172_vm3 = vcmask 7168  }
  0x6e   : > { %589 = vmatpush1.bf16.msra.mxu0 %v2095_v22  ;;  %v2119_v40 = vld [vmem:[%s2491_s14 + $0x28] sm:$0xff]   ;;  %v2120_v41 = vld [vmem:[%s2491_s14 + $0x30] sm:$0xff]   ;;  %v2121_v42 = vld [vmem:[%s2491_s14 + $0x38] sm:$0xff]   ;;  %v733_v45 = vadd.s32 128, %v732_v44  ;;  %v735_v47 = vadd.s32 %v734_v46, %v732_v44 }
  0x6f   : > { %590 = vmatprep.subr.bf16.mxu0 %v2096_v23  ;;  %v2126_v51 = vld [vmem:[%s2502_s28 + $0x50] sm:$0xff]   ;;  %v2744_v54 = vld [vmem:[#allocation2] sm:$0xff] }
  0x70   : > { %v736_v48 = vadd.s32 %v734_v46, %v733_v45  ;;  %vm2570_vm1 = vcmp.lt.s32.totalorder %v735_v47, %v737_v49 }
  0x72   : > { %591 = vmatpush1.bf16.msra.mxu0 %v2098_v24  ;;  %vm2574_vm2 = vcmp.lt.s32.totalorder %v736_v48, %v737_v49 }
  0x73   : > { %592 = vmatprep.subr.bf16.mxu0 %v2099_v25 }
  0x76   : > { %593 = vmatpush1.bf16.msra.mxu0 %v2101_v26 }
  0x77   : > { %594 = vmatprep.subr.bf16.mxu0 %v2102_v27 }
  0x7a   : > { %595 = vmatpush1.bf16.msra.mxu0 %v2104_v28 }
  0x7b   : > { %596 = vmatprep.subr.bf16.mxu0 %v2105_v29 }
  0x7e   : > { %597 = vmatpush1.bf16.msra.mxu0 %v2107_v30 }
  0x7f   : > { %598 = vmatprep.subr.bf16.mxu0 %v2108_v31 }
  0x82   : > { %599 = vmatpush1.bf16.msra.mxu0 %v2110_v32 }
  0x83   : > { %600 = vmatprep.subr.bf16.mxu0 %v2111_v33 }
  0x86   : > { %601 = vmatpush1.bf16.msra.mxu0 %v2113_v34 }
  0x89   : > { %619 = vmatmul.mubr.bf16.vlgmr.msra.gmra.mrb[0].mxu0 %v2114_v35 }
  0x8a   : > { %628 = vmatprep.mubr.bf16.mxu0 %v2357_v20 }
  0x91   : > { %629 = vmatmul.mubr.bf16.gmra.mrb[4].mxu0 %v2115_v36 }
  0x92   : > { %638 = vmatprep.mubr.bf16.mxu0 %v2357_v20 }
  0x99   : > { %639 = vmatmul.mubr.bf16.gmra.mrb[8].mxu0 %v2116_v37 }
  0x9a   : > { %648 = vmatprep.mubr.bf16.mxu0 %v2357_v20 }
  0xa1   : > { %649 = vmatmul.mubr.bf16.gmra.mrb[12].mxu0 %v2117_v38 }
  0xa2   : > { %658 = vmatprep.mubr.bf16.mxu0 %v2357_v20 }
  0xa9   : > { %659 = vmatmul.mubr.bf16.gmra.mrb[16].mxu0 %v2118_v39 }
  0xaa   : > { %668 = vmatprep.mubr.bf16.mxu0 %v2357_v20 }
  0xb1   : > { %669 = vmatmul.mubr.bf16.gmra.mrb[20].mxu0 %v2119_v40 }
  0xb2   : > { %678 = vmatprep.mubr.bf16.mxu0 %v2357_v20 }
  0xb9   : > { %679 = vmatmul.mubr.bf16.gmra.mrb[24].mxu0 %v2120_v41 }
  0xba   : > { %688 = vmatprep.mubr.bf16.mxu0 %v2357_v20 }
  0xc1   : > { %689 = vmatmul.mubr.bf16.gmra.mrb[28].mxu0 %v2121_v42 }
 0x15c   : > { %v620_v50 = vpop.f32.mrb[0].mxu0 }
 0x15d   : > { %v699_v52 = vmul.f32 0.125, %v620_v50  ;;  %v622_v53 = vpop.f32.mrb[1].mxu0 }
 0x15e   : > { %v700_v55 = vmul.f32 0.125, %v622_v53  ;;  %v624_v56 = vpop.f32.mrb[2].mxu0 }
 0x15f   : > { %v701_v57 = vmul.f32 0.125, %v624_v56  ;;  %v626_v58 = vpop.f32.mrb[3].mxu0  ;;  %v2580_v59 = vsel %vm2570_vm1, %v699_v52, -inf }
 0x160   : > { %v702_v60 = vmul.f32 0.125, %v626_v58  ;;  %v2584_v61 = vsel %vm2574_vm2, %v700_v55, -inf }
 0x161   : > { %v788_v62 = vmax.f32 %v2580_v59, %v2584_v61  ;;  %v2590_v63 = vsel %vm2570_vm1, %v701_v57, -inf }
 0x162   : > { %v2594_v0 = vsel %vm2574_vm2, %v702_v60, -inf }
 0x163   : > { %789 = vmax.xlane.f32.xlu0 %v788_v62  ;;  %v791_v4 = vmax.f32 %v2590_v63, %v2594_v0 }
 0x164   : > { %v630_v1 = vpop.f32.mrb[4].mxu0 }
 0x165   : > { %v703_v2 = vmul.f32 0.125, %v630_v1  ;;  %v632_v3 = vpop.f32.mrb[5].mxu0 }
 0x166   : > { %v704_v5 = vmul.f32 0.125, %v632_v3  ;;  %v634_v6 = vpop.f32.mrb[6].mxu0 }
 0x167   : > { %v705_v7 = vmul.f32 0.125, %v634_v6  ;;  %792 = vmax.xlane.f32.xlu0 %v791_v4  ;;  %v636_v8 = vpop.f32.mrb[7].mxu0  ;;  %v2600_v9 = vsel %vm2570_vm1, %v703_v2, -inf }
 0x168   : > { %v706_v10 = vmul.f32 0.125, %v636_v8  ;;  %v2604_v11 = vsel %vm2574_vm2, %v704_v5, -inf }
 0x169   : > { %v794_v12 = vmax.f32 %v2600_v9, %v2604_v11  ;;  %v2610_v13 = vsel %vm2570_vm1, %v705_v7, -inf }
 0x16a   : > { %v2614_v14 = vsel %vm2574_vm2, %v706_v10, -inf }
 0x16b   : > { %795 = vmax.xlane.f32.xlu1 %v794_v12  ;;  %v797_v18 = vmax.f32 %v2610_v13, %v2614_v14 }
 0x16c   : > { %v640_v15 = vpop.f32.mrb[8].mxu0 }
 0x16d   : > { %v707_v16 = vmul.f32 0.125, %v640_v15  ;;  %v642_v17 = vpop.f32.mrb[9].mxu0 }
 0x16e   : > { %v708_v19 = vmul.f32 0.125, %v642_v17  ;;  %v644_v20 = vpop.f32.mrb[10].mxu0 }
 0x16f   : > { %v709_v21 = vmul.f32 0.125, %v644_v20  ;;  %798 = vmax.xlane.f32.xlu1 %v797_v18  ;;  %v646_v22 = vpop.f32.mrb[11].mxu0  ;;  %v2620_v23 = vsel %vm2570_vm1, %v707_v16, -inf }
 0x170   : > { %v710_v24 = vmul.f32 0.125, %v646_v22  ;;  %v2624_v25 = vsel %vm2574_vm2, %v708_v19, -inf }
 0x171   : > { %v800_v26 = vmax.f32 %v2620_v23, %v2624_v25  ;;  %v2630_v27 = vsel %vm2570_vm1, %v709_v21, -inf }
 0x172   : > { %v2634_v28 = vsel %vm2574_vm2, %v710_v24, -inf }
 0x173   : > { %801 = vmax.xlane.f32.xlu0 %v800_v26  ;;  %v803_v29 = vmax.f32 %v2630_v27, %v2634_v28 }
 0x174   : > { %v650_v30 = vpop.f32.mrb[12].mxu0 }
 0x175   : > { %v711_v31 = vmul.f32 0.125, %v650_v30  ;;  %804 = vmax.xlane.f32.xlu1 %v803_v29  ;;  %v652_v32 = vpop.f32.mrb[13].mxu0 }
 0x176   : > { %v712_v33 = vmul.f32 0.125, %v652_v32  ;;  %v654_v34 = vpop.f32.mrb[14].mxu0 }
 0x177   : > { %v713_v35 = vmul.f32 0.125, %v654_v34  ;;  %v656_v36 = vpop.f32.mrb[15].mxu0  ;;  %v2640_v37 = vsel %vm2570_vm1, %v711_v31, -inf }
 0x178   : > { %v714_v38 = vmul.f32 0.125, %v656_v36  ;;  %v2644_v39 = vsel %vm2574_vm2, %v712_v33, -inf }
 0x179   : > { %v806_v40 = vmax.f32 %v2640_v37, %v2644_v39  ;;  %v2650_v41 = vsel %vm2570_vm1, %v713_v35, -inf }
 0x17a   : > { %v2654_v42 = vsel %vm2574_vm2, %v714_v38, -inf }
 0x17b   : > { %807 = vmax.xlane.f32.xlu0 %v806_v40  ;;  %v809_v43 = vmax.f32 %v2650_v41, %v2654_v42 }
 0x17c   : > { %v660_v44 = vpop.f32.mrb[16].mxu0 }
 0x17d   : > { %v715_v45 = vmul.f32 0.125, %v660_v44  ;;  %810 = vmax.xlane.f32.xlu1 %v809_v43  ;;  %v662_v46 = vpop.f32.mrb[17].mxu0 }
 0x17e   : > { %v716_v47 = vmul.f32 0.125, %v662_v46  ;;  %v664_v48 = vpop.f32.mrb[18].mxu0 }
 0x17f   : > { %v717_v49 = vmul.f32 0.125, %v664_v48  ;;  %v666_v50 = vpop.f32.mrb[19].mxu0  ;;  %v2660_v52 = vsel %vm2570_vm1, %v715_v45, -inf }
 0x180   : > { %v718_v53 = vmul.f32 0.125, %v666_v50  ;;  %v2664_v55 = vsel %vm2574_vm2, %v716_v47, -inf }
 0x181   : > { %v812_v56 = vmax.f32 %v2660_v52, %v2664_v55  ;;  %v2670_v57 = vsel %vm2570_vm1, %v717_v49, -inf }
 0x182   : > { %v2674_v58 = vsel %vm2574_vm2, %v718_v53, -inf }
 0x183   : > { %813 = vmax.xlane.f32.xlu0 %v812_v56  ;;  %v815_v60 = vmax.f32 %v2670_v57, %v2674_v58 }
 0x184   : > { %v670_v62 = vpop.f32.mrb[20].mxu0 }
 0x185   : > { %v719_v1 = vmul.f32 0.125, %v670_v62  ;;  %816 = vmax.xlane.f32.xlu1 %v815_v60  ;;  %v672_v2 = vpop.f32.mrb[21].mxu0  ;;  %v2122_v62 = vld [vmem:[%s2502_s28 + $0x40] sm:$0xff]  }
 0x186   : > { %v720_v3 = vmul.f32 0.125, %v672_v2  ;;  %v674_v4 = vpop.f32.mrb[22].mxu0  ;;  %v2124_v2 = vld [vmem:[%s2502_s28 + $0x48] sm:$0xff]   ;;  %1945 = vmatprep.subr.bf16.mxu1 %v2122_v62  ;;  %v2136_v62 = vld [vmem:[%s2502_s28 + $0x78] sm:$0xff]  }
 0x187   : > { %v721_v5 = vmul.f32 0.125, %v674_v4  ;;  %v676_v6 = vpop.f32.mrb[23].mxu0  ;;  %v2680_v7 = vsel %vm2570_vm1, %v719_v1, -inf  ;;  %v2123_v1 = vld [vmem:[%s2502_s28] sm:$0xff]   ;;  %v2127_v4 = vld [vmem:[%s2502_s28 + $0x10] sm:$0xff]  }
 0x188   : > { %v722_v8 = vmul.f32 0.125, %v676_v6  ;;  %v2684_v10 = vsel %vm2574_vm2, %v720_v3, -inf  ;;  %1946 = vmatpush3.bf16.msra.mxu1 %v2123_v1  ;;  %v2125_v3 = vld [vmem:[%s2502_s28 + $0x8] sm:$0xff]   ;;  %v2137_v1 = vld [vmem:[%s2502_s28 + $0x38] sm:$0xff]  }
 0x189   : > { %v818_v12 = vmax.f32 %v2680_v7, %v2684_v10  ;;  %v2690_v15 = vsel %vm2570_vm1, %v721_v5, -inf  ;;  %1947 = vmatprep.subr.bf16.mxu1 %v2124_v2  ;;  %v2801_v2 = vld [vmem:[#allocation2 + $0x30] sm:$0xff] }
 0x18a   : > { %v2694_v16 = vsel %vm2574_vm2, %v722_v8, -inf  ;;  %v2749_v8 = vld [vmem:[#allocation2 + $0x8] sm:$0xff] }
 0x18b   : > { %819 = vmax.xlane.f32.xlu0 %v818_v12  ;;  %v821_v17 = vmax.f32 %v2690_v15, %v2694_v16 }
 0x18c   : > { %v680_v18 = vpop.f32.mrb[24].mxu0  ;;  %1948 = vmatpush3.bf16.msra.mxu1 %v2125_v3 }
 0x18d   : > { %v723_v19 = vmul.f32 0.125, %v680_v18  ;;  %822 = vmax.xlane.f32.xlu1 %v821_v17  ;;  %v682_v20 = vpop.f32.mrb[25].mxu0  ;;  %1949 = vmatprep.subr.bf16.mxu1 %v2126_v51  ;;  %v2128_v17 = vld [vmem:[%s2502_s28 + $0x58] sm:$0xff]  }
 0x18e   : > { %v724_v21 = vmul.f32 0.125, %v682_v20  ;;  %v684_v22 = vpop.f32.mrb[26].mxu0  ;;  %v2759_v20 = vld [vmem:[#allocation2 + $0x10] sm:$0xff]  ;;  %v2804_v51 = vld [vmem:[#allocation2 + $0x38] sm:$0xff] }
 0x18f   : > { %v725_v24 = vmul.f32 0.125, %v684_v22  ;;  %v686_v26 = vpop.f32.mrb[27].mxu0  ;;  %v2700_v29 = vsel %vm2570_vm1, %v723_v19, -inf  ;;  %v2129_v19 = vld [vmem:[%s2502_s28 + $0x18] sm:$0xff]   ;;  %v2130_v22 = vld [vmem:[%s2502_s28 + $0x60] sm:$0xff]  }
 0x190   : > { %v726_v30 = vmul.f32 0.125, %v686_v26  ;;  %v2704_v31 = vsel %vm2574_vm2, %v724_v21, -inf  ;;  %1950 = vmatpush3.bf16.msra.mxu1 %v2127_v4  ;;  %v2131_v26 = vld [vmem:[%s2502_s28 + $0x20] sm:$0xff]  }
 0x191   : > { %v824_v32 = vmax.f32 %v2700_v29, %v2704_v31  ;;  %v2710_v33 = vsel %vm2570_vm1, %v725_v24, -inf  ;;  %1951 = vmatprep.subr.bf16.mxu1 %v2128_v17  ;;  %v2817_v17 = vld [vmem:[#allocation2 + $0x40] sm:$0xff] }
 0x192   : > { %v2714_v34 = vsel %vm2574_vm2, %v726_v30, -inf  ;;  %v2769_v30 = vld [vmem:[#allocation2 + $0x18] sm:$0xff] }
 0x193   : > { %825 = vmax.xlane.f32.xlu0 %v824_v32  ;;  %v827_v35 = vmax.f32 %v2710_v33, %v2714_v34 }
 0x194   : > { %v690_v36 = vpop.f32.mrb[28].mxu0  ;;  %1952 = vmatpush3.bf16.msra.mxu1 %v2129_v19 }
 0x195   : > { %v727_v38 = vmul.f32 0.125, %v690_v36  ;;  %828 = vmax.xlane.f32.xlu1 %v827_v35  ;;  %v692_v40 = vpop.f32.mrb[29].mxu0  ;;  %1953 = vmatprep.subr.bf16.mxu1 %v2130_v22  ;;  %v2132_v35 = vld [vmem:[%s2502_s28 + $0x68] sm:$0xff]  }
 0x196   : > { %v728_v43 = vmul.f32 0.125, %v692_v40  ;;  %v694_v44 = vpop.f32.mrb[30].mxu0  ;;  %v2779_v40 = vld [vmem:[#allocation2 + $0x20] sm:$0xff] }
 0x197   : > { %v729_v45 = vmul.f32 0.125, %v694_v44  ;;  %v696_v46 = vpop.f32.mrb[31].mxu0  ;;  %v2720_v47 = vsel %vm2570_vm1, %v727_v38, -inf  ;;  %v2133_v38 = vld [vmem:[%s2502_s28 + $0x28] sm:$0xff]  }
 0x198   : > { %v730_v48 = vmul.f32 0.125, %v696_v46  ;;  %v2724_v49 = vsel %vm2574_vm2, %v728_v43, -inf  ;;  %1954 = vmatpush3.bf16.msra.mxu1 %v2131_v26  ;;  %v2784_v44 = vld [vmem:[#allocation2 + $0x28] sm:$0xff] }
 0x199   : > { %v830_v50 = vmax.f32 %v2720_v47, %v2724_v49  ;;  %v2730_v53 = vsel %vm2570_vm1, %v729_v45, -inf  ;;  %1955 = vmatprep.subr.bf16.mxu1 %v2132_v35  ;;  %v2134_v45 = vld [vmem:[%s2502_s28 + $0x70] sm:$0xff]  }
 0x19a   : > { %v2734_v56 = vsel %vm2574_vm2, %v730_v48, -inf  ;;  %v2135_v48 = vld [vmem:[%s2502_s28 + $0x30] sm:$0xff]  }
 0x19b   : > { %3130 = vst [vmem:[#allocation12_spill] sm:$0xff] %v2734_v56  ;;  %831 = vmax.xlane.f32.xlu0 %v830_v50  ;;  %v833_v60 = vmax.f32 %v2730_v53, %v2734_v56  ;;  %v2834_v35 = vld [vmem:[#allocation2 + $0x50] sm:$0xff] }
 0x19c   : > { %1956 = vmatpush3.bf16.msra.mxu1 %v2133_v38 }
 0x19d   : > { %834 = vmax.xlane.f32.xlu1 %v833_v60  ;;  %1957 = vmatprep.subr.bf16.mxu1 %v2134_v45 }
 0x1a0   : > { %1958 = vmatpush3.bf16.msra.mxu1 %v2135_v48 }
 0x1a1   : > { %1959 = vmatprep.subr.bf16.mxu1 %v2136_v62 }
 0x1a4   : > { %1960 = vmatpush3.bf16.msra.mxu1 %v2137_v1 }
 0x1f0   : > { %v790_v5 = vpop.xlane.xlu0 %789 }
 0x1f1   : > { %v2747_v6 = vmax.f32 %v2744_v54, %v790_v5 }
 0x1f3   : > { %1574 = vst.msk [vmem:[#allocation2] sm:$0xff] %vm1172_vm3, %v2747_v6  ;;  %902 = vperm.xlu0 %2088, %v2747_v6   ;;  %v852_v1 = vsub.f32 %v2744_v54, %v2747_v6 }
 0x1f4   : > { %v793_v12 = vpop.xlane.xlu0 %792 }
 0x1f5   : > { %v2756_v18 = vmax.f32 %v2749_v8, %v793_v12 }
 0x1f7   : > { %1575 = vst.msk [vmem:[#allocation2 + $0x8] sm:$0xff] %vm1172_vm3, %v2756_v18  ;;  %907 = vperm.xlu1 %2089, %v2756_v18   ;;  %v853_v62 = vsub.f32 %v2749_v8, %v2756_v18  ;;  %v868_v8 = vmul.f32 1.442695, %v852_v1 }
 0x1f8   : > { %v796_v21 = vpop.xlane.xlu1 %795 }
 0x1f9   : > { %v2766_v24 = vmax.f32 %v2759_v20, %v796_v21  ;;  %v2820_v21 = vld [vmem:[#allocation2 + $0x48] sm:$0xff] }
 0x1fb   : > { %1576 = vst.msk [vmem:[#allocation2 + $0x10] sm:$0xff] %vm1172_vm3, %v2766_v24  ;;  %912 = vperm.xlu1 %2089, %v2766_v24  }
 0x1fc   : > { %v799_v32 = vpop.xlane.xlu1 %798 }
 0x1fd   : > { %v2776_v36 = vmax.f32 %v2769_v30, %v799_v32 }
 0x1ff   : > { %1577 = vst.msk [vmem:[#allocation2 + $0x18] sm:$0xff] %vm1172_vm3, %v2776_v36  ;;  %917 = vperm.xlu1 %2089, %v2776_v36   ;;  %v855_v18 = vsub.f32 %v2769_v30, %v2776_v36  ;;  %v2874_v36 = vld [vmem:[#allocation2 + $0x70] sm:$0xff] }
 0x200   : > { %v802_v43 = vpop.xlane.xlu0 %801 }
 0x201   : > { %v2788_v46 = vmax.f32 %v2779_v40, %v802_v43  ;;  %v2836_v43 = vld [vmem:[#allocation2 + $0x58] sm:$0xff] }
 0x202   : > { %v805_v50 = vpop.xlane.xlu1 %804 }
 0x203   : > { %1578 = vst.msk [vmem:[#allocation2 + $0x20] sm:$0xff] %vm1172_vm3, %v2788_v46  ;;  %v2794_v60 = vmax.f32 %v2784_v44, %v805_v50  ;;  %922 = vperm.xlu1 %2089, %v2788_v46  }
 0x205   : > { %1579 = vst.msk [vmem:[#allocation2 + $0x28] sm:$0xff] %vm1172_vm3, %v2794_v60  ;;  %v857_v30 = vsub.f32 %v2784_v44, %v2794_v60 }
 0x207   : > { %927 = vperm.xlu1 %2089, %v2794_v60  }
 0x208   : > { %v808_v3 = vpop.xlane.xlu0 %807 }
 0x209   : > { %v2807_v4 = vmax.f32 %v2801_v2, %v808_v3  ;;  %v2854_v3 = vld [vmem:[#allocation2 + $0x60] sm:$0xff] }
 0x20a   : > { %v811_v5 = vpop.xlane.xlu1 %810 }
 0x20b   : > { %1580 = vst.msk [vmem:[#allocation2 + $0x30] sm:$0xff] %vm1172_vm3, %v2807_v4  ;;  %v2812_v12 = vmax.f32 %v2804_v51, %v811_v5  ;;  %932 = vperm.xlu1 %2089, %v2807_v4   ;;  %v870_v5 = vmul.f32 1.442695, %v853_v62 }
 0x20d   : > { %1581 = vst.msk [vmem:[#allocation2 + $0x38] sm:$0xff] %vm1172_vm3, %v2812_v12  ;;  %2138 = vpow2.f32 %v870_v5  ;;  %v2878_v5 = vld [vmem:[#allocation2 + $0x78] sm:$0xff] }
 0x20e   : > { %2140 = vpow2.f32 %v868_v8 }
 0x20f   : > { %937 = vperm.xlu1 %2089, %v2812_v12  }
 0x210   : > { %v814_v19 = vpop.xlane.xlu0 %813 }
 0x211   : > { %v2823_v22 = vmax.f32 %v2817_v17, %v814_v19  ;;  %v854_v19 = vsub.f32 %v2759_v20, %v2766_v24  ;;  %v856_v20 = vsub.f32 %v2779_v40, %v2788_v46  ;;  %v874_v24 = vmul.f32 1.442695, %v855_v18 }
 0x212   : > { %v817_v26 = vpop.xlane.xlu1 %816  ;;  %v878_v46 = vmul.f32 1.442695, %v857_v30 }
 0x213   : > { %1582 = vst.msk [vmem:[#allocation2 + $0x40] sm:$0xff] %vm1172_vm3, %v2823_v22  ;;  %v2828_v32 = vmax.f32 %v2820_v21, %v817_v26  ;;  %942 = vperm.xlu1 %2089, %v2823_v22   ;;  %v872_v6 = vmul.f32 1.442695, %v854_v19  ;;  %v876_v62 = vmul.f32 1.442695, %v856_v20  ;;  %v859_v19 = vsub.f32 %v2804_v51, %v2812_v12 }
 0x215   : > { %1583 = vst.msk [vmem:[#allocation2 + $0x48] sm:$0xff] %vm1172_vm3, %v2828_v32  ;;  %947 = vperm.xlu0 %2088, %v2828_v32   ;;  %2142 = vpow2.f32 %v872_v6  ;;  %v882_v8 = vmul.f32 1.442695, %v859_v19  ;;  %v861_v18 = vsub.f32 %v2820_v21, %v2828_v32 }
 0x216   : > { %2144 = vpow2.f32 %v874_v24 }
 0x217   : > { %2146 = vpow2.f32 %v876_v62  ;;  %v2900_v12 = vpop.eup %2138  ;;  %v886_v24 = vmul.f32 1.442695, %v861_v18 }
 0x218   : > { %v820_v38 = vpop.xlane.xlu0 %819  ;;  %2148 = vpow2.f32 %v878_v46  ;;  %v2905_v6 = vpop.eup %2140 }
 0x219   : > { %v2839_v45 = vmax.f32 %v2834_v35, %v820_v38  ;;  %v2858_v38 = vld [vmem:[#allocation2 + $0x68] sm:$0xff] }
 0x21a   : > { %v823_v48 = vpop.xlane.xlu1 %822 }
 0x21b   : > { %1584 = vst.msk [vmem:[#allocation2 + $0x50] sm:$0xff] %vm1172_vm3, %v2839_v45  ;;  %v2844_v50 = vmax.f32 %v2836_v43, %v823_v48  ;;  %952 = vperm.xlu1 %2089, %v2839_v45  }
 0x21d   : > { %1585 = vst.msk [vmem:[#allocation2 + $0x58] sm:$0xff] %vm1172_vm3, %v2844_v50  ;;  %957 = vperm.xlu0 %2088, %v2844_v50   ;;  %v863_v30 = vsub.f32 %v2836_v43, %v2844_v50 }
 0x21f   : > { %v2910_v20 = vpop.eup %2142 }
 0x220   : > { %v826_v26 = vpop.xlane.xlu0 %825  ;;  %v2915_v21 = vpop.eup %2144 }
 0x221   : > { %v2861_v48 = vmax.f32 %v2854_v3, %v826_v26 }
 0x222   : > { %v829_v56 = vpop.xlane.xlu1 %828 }
 0x223   : > { %1586 = vst.msk [vmem:[#allocation2 + $0x60] sm:$0xff] %vm1172_vm3, %v2861_v48  ;;  %v849_v54 = vmax.f32 %v2858_v38, %v829_v56  ;;  %962 = vperm.xlu1 %2089, %v2861_v48   ;;  %v858_v56 = vsub.f32 %v2801_v2, %v2807_v4  ;;  %v860_v4 = vsub.f32 %v2817_v17, %v2823_v22 }
 0x224   : > { %v862_v22 = vsub.f32 %v2834_v35, %v2839_v45  ;;  %v864_v62 = vsub.f32 %v2854_v3, %v2861_v48  ;;  %v2920_v35 = vpop.eup %2146  ;;  %v890_v45 = vmul.f32 1.442695, %v863_v30 }
 0x225   : > { %1587 = vst.msk [vmem:[#allocation2 + $0x68] sm:$0xff] %vm1172_vm3, %v849_v54  ;;  %967 = vperm.xlu0 %2088, %v849_v54   ;;  %v880_v2 = vmul.f32 1.442695, %v858_v56  ;;  %v884_v17 = vmul.f32 1.442695, %v860_v4  ;;  %v865_v56 = vsub.f32 %v2858_v38, %v849_v54  ;;  %v2924_v43 = vpop.eup %2148 }
 0x226   : > { %v888_v32 = vmul.f32 1.442695, %v862_v22  ;;  %v892_v50 = vmul.f32 1.442695, %v864_v62 }
 0x227   : > { %2150 = vpow2.f32 %v880_v2  ;;  %v894_v3 = vmul.f32 1.442695, %v865_v56 }
 0x228   : > { %v832_v1 = vpop.xlane.xlu0 %831  ;;  %2152 = vpow2.f32 %v882_v8 }
 0x229   : > { %v2881_v40 = vmax.f32 %v2874_v36, %v832_v1  ;;  %2154 = vpow2.f32 %v884_v17 }
 0x22a   : > { %v835_v26 = vpop.xlane.xlu1 %834  ;;  %2156 = vpow2.f32 %v886_v24 }
 0x22b   : > { %v866_v44 = vsub.f32 %v2874_v36, %v2881_v40  ;;  %1588 = vst.msk [vmem:[#allocation2 + $0x70] sm:$0xff] %vm1172_vm3, %v2881_v40  ;;  %v2890_v60 = vmax.f32 %v2878_v5, %v835_v26  ;;  %972 = vperm.xlu1 %2089, %v2881_v40   ;;  %2158 = vpow2.f32 %v888_v32 }
 0x22c   : > { %2160 = vpow2.f32 %v890_v45 }
 0x22d   : > { %v867_v51 = vsub.f32 %v2878_v5, %v2890_v60  ;;  %1589 = vst.msk [vmem:[#allocation2 + $0x78] sm:$0xff] %vm1172_vm3, %v2890_v60  ;;  %977 = vperm.xlu0 %2088, %v2890_v60   ;;  %2162 = vpow2.f32 %v892_v50 }
 0x22e   : > { %2164 = vpow2.f32 %v894_v3 }
 0x22f   : > { %1212 = vperm.xlu1 %2089, %v2900_v12  }
 0x231   : > { %1207 = vperm.xlu0 %2088, %v2905_v6   ;;  %v2927_v1 = vpop.eup %2150 }
 0x232   : > { %v2930_v48 = vpop.eup %2152 }
 0x233   : > { %1217 = vperm.xlu1 %2089, %v2910_v20   ;;  %v2933_v38 = vpop.eup %2154 }
 0x234   : > { %v2936_v54 = vpop.eup %2156 }
 0x235   : > { %1222 = vperm.xlu0 %2088, %v2915_v21   ;;  %v2939_v46 = vpop.eup %2158 }
 0x236   : > { %v2942_v19 = vpop.eup %2160 }
 0x237   : > { %1227 = vperm.xlu1 %2089, %v2920_v35   ;;  %v2945_v26 = vpop.eup %2162 }
 0x238   : > { %v2948_v2 = vpop.eup %2164 }
 0x239   : > { %1232 = vperm.xlu0 %2088, %v2924_v43  }
 0x23b   : > { %1237 = vperm.xlu1 %2089, %v2927_v1  }
 0x23d   : > { %1242 = vperm.xlu0 %2088, %v2930_v48  }
 0x23f   : > { %1247 = vperm.xlu1 %2089, %v2933_v38  }
 0x241   : > { %1252 = vperm.xlu0 %2088, %v2936_v54  }
 0x243   : > { %1257 = vperm.xlu1 %2089, %v2939_v46  }
 0x245   : > { %1262 = vperm.xlu0 %2088, %v2942_v19  }
 0x247   : > { %1267 = vperm.xlu1 %2089, %v2945_v26  }
 0x249   : > { %1272 = vperm.xlu0 %2088, %v2948_v2  }
 0x272   : > { %v903_v4 = vpop.permute.xlu0 %902 }
 0x273   : > { %v980_v8 = vsub.f32 %v2580_v59, %v903_v4  ;;  %v981_v18 = vsub.f32 %v2584_v61, %v903_v4 }
 0x275   : > { %v1012_v17 = vmul.f32 1.442695, %v980_v8  ;;  %v1014_v22 = vmul.f32 1.442695, %v981_v18 }
 0x276   : > { %v908_v24 = vpop.permute.xlu1 %907 }
 0x277   : > { %2166 = vpow2.f32 %v1012_v17  ;;  %v982_v30 = vsub.f32 %v2590_v63, %v908_v24  ;;  %v983_v32 = vsub.f32 %v2594_v0, %v908_v24 }
 0x278   : > { %2168 = vpow2.f32 %v1014_v22 }
 0x279   : > { %v1016_v62 = vmul.f32 1.442695, %v982_v30  ;;  %v1018_v45 = vmul.f32 1.442695, %v983_v32 }
 0x27a   : > { %v913_v56 = vpop.permute.xlu1 %912 }
 0x27b   : > { %2170 = vpow2.f32 %v1016_v62  ;;  %v984_v50 = vsub.f32 %v2600_v9, %v913_v56  ;;  %v985_v3 = vsub.f32 %v2604_v11, %v913_v56 }
 0x27c   : > { %2172 = vpow2.f32 %v1018_v45 }
 0x27d   : > { %v1020_v59 = vmul.f32 1.442695, %v984_v50  ;;  %v1022_v61 = vmul.f32 1.442695, %v985_v3 }
 0x27e   : > { %v918_v4 = vpop.permute.xlu1 %917 }
 0x27f   : > { %2174 = vpow2.f32 %v1020_v59  ;;  %v986_v8 = vsub.f32 %v2610_v13, %v918_v4  ;;  %v987_v63 = vsub.f32 %v2614_v14, %v918_v4 }
 0x280   : > { %2176 = vpow2.f32 %v1022_v61 }
 0x281   : > { %v2167_v0 = vpop.eup %2166  ;;  %v1024_v18 = vmul.f32 1.442695, %v986_v8  ;;  %v1026_v17 = vmul.f32 1.442695, %v987_v63 }
 0x282   : > { %v2169_v22 = vpop.eup %2168  ;;  %v923_v24 = vpop.permute.xlu1 %922 }
 0x283   : > { %2178 = vpow2.f32 %v1024_v18  ;;  %v988_v9 = vsub.f32 %v2620_v23, %v923_v24  ;;  %v989_v11 = vsub.f32 %v2624_v25, %v923_v24  ;;  %v1108_v30 = vadd.f32 %v2169_v22, %v2167_v0 }
 0x284   : > { %2180 = vpow2.f32 %v1026_v17 }
 0x285   : > { %v2171_v32 = vpop.eup %2170  ;;  %v1028_v62 = vmul.f32 1.442695, %v988_v9  ;;  %v1030_v45 = vmul.f32 1.442695, %v989_v11  ;;  %1109 = vadd.xlane.f32.xlu1 %v1108_v30 }
 0x286   : > { %v2173_v13 = vpop.eup %2172  ;;  %v928_v56 = vpop.permute.xlu1 %927  ;;  %v1301_v14 = vpack.c.bf16 %v2171_v32, %v2167_v0 }
 0x287   : > { %2182 = vpow2.f32 %v1028_v62  ;;  %v990_v50 = vsub.f32 %v2630_v27, %v928_v56  ;;  %v991_v3 = vsub.f32 %v2634_v28, %v928_v56  ;;  %v1302_v59 = vpack.c.bf16 %v2173_v13, %v2169_v22 }
 0x288   : > { %2184 = vpow2.f32 %v1030_v45  ;;  %v1111_v61 = vadd.f32 %v2173_v13, %v2171_v32 }
 0x289   : > { %v2175_v23 = vpop.eup %2174  ;;  %v1032_v4 = vmul.f32 1.442695, %v990_v50  ;;  %v1034_v25 = vmul.f32 1.442695, %v991_v3  ;;  %1477 = vmatprep.mubr.bf16.mxu1 %v1302_v59 }
 0x28a   : > { %v2177_v8 = vpop.eup %2176  ;;  %1112 = vadd.xlane.f32.xlu0 %v1111_v61  ;;  %1478 = vmatmul.mubr.bf16.vlgmr.msra.gmra.mrb[0].mxu1 %v1301_v14  ;;  %v933_v63 = vpop.permute.xlu1 %932 }
 0x28b   : > { %2186 = vpow2.f32 %v1032_v4  ;;  %v992_v18 = vsub.f32 %v2640_v37, %v933_v63  ;;  %v993_v0 = vsub.f32 %v2644_v39, %v933_v63  ;;  %v1114_v17 = vadd.f32 %v2177_v8, %v2175_v23 }
 0x28c   : > { %2188 = vpow2.f32 %v1034_v25 }
 0x28d   : > { %v2179_v27 = vpop.eup %2178  ;;  %v1036_v28 = vmul.f32 1.442695, %v992_v18  ;;  %v1038_v22 = vmul.f32 1.442695, %v993_v0 }
 0x28e   : > { %v2181_v24 = vpop.eup %2180  ;;  %1115 = vadd.xlane.f32.xlu0 %v1114_v17  ;;  %v938_v9 = vpop.permute.xlu1 %937  ;;  %v1303_v11 = vpack.c.bf16 %v2179_v27, %v2175_v23 }
 0x28f   : > { %2190 = vpow2.f32 %v1036_v28  ;;  %v994_v30 = vsub.f32 %v2650_v41, %v938_v9  ;;  %v995_v32 = vsub.f32 %v2654_v42, %v938_v9  ;;  %v1304_v62 = vpack.c.bf16 %v2181_v24, %v2177_v8 }
 0x290   : > { %2192 = vpow2.f32 %v1038_v22  ;;  %v1117_v45 = vadd.f32 %v2181_v24, %v2179_v27 }
 0x291   : > { %v2183_v37 = vpop.eup %2182  ;;  %v1040_v13 = vmul.f32 1.442695, %v994_v30  ;;  %v1042_v39 = vmul.f32 1.442695, %v995_v32  ;;  %1485 = vmatprep.mubr.bf16.mxu1 %v1304_v62 }
 0x292   : > { %v2185_v56 = vpop.eup %2184  ;;  %1118 = vadd.xlane.f32.xlu1 %v1117_v45  ;;  %1486 = vmatmul.mubr.bf16.gmra.mrb[4].mxu1 %v1303_v11  ;;  %v943_v14 = vpop.permute.xlu1 %942 }
 0x293   : > { %2194 = vpow2.f32 %v1040_v13  ;;  %v996_v50 = vsub.f32 %v2660_v52, %v943_v14  ;;  %v997_v3 = vsub.f32 %v2664_v55, %v943_v14  ;;  %v1120_v59 = vadd.f32 %v2185_v56, %v2183_v37 }
 0x294   : > { %2196 = vpow2.f32 %v1042_v39  ;;  %v948_v41 = vpop.permute.xlu0 %947 }
 0x295   : > { %v2187_v42 = vpop.eup %2186  ;;  %v1044_v61 = vmul.f32 1.442695, %v996_v50  ;;  %v1046_v23 = vmul.f32 1.442695, %v997_v3  ;;  %v998_v4 = vsub.f32 %v2670_v57, %v948_v41  ;;  %v999_v25 = vsub.f32 %v2674_v58, %v948_v41  ;;  %1121 = vadd.xlane.f32.xlu0 %v1120_v59 }
 0x296   : > { %v2189_v8 = vpop.eup %2188  ;;  %v1305_v63 = vpack.c.bf16 %v2187_v42, %v2183_v37 }
 0x297   : > { %2198 = vpow2.f32 %v1044_v61  ;;  %v1048_v18 = vmul.f32 1.442695, %v998_v4  ;;  %v1050_v0 = vmul.f32 1.442695, %v999_v25  ;;  %v1306_v17 = vpack.c.bf16 %v2189_v8, %v2185_v56 }
 0x298   : > { %2200 = vpow2.f32 %v1046_v23  ;;  %v1123_v52 = vadd.f32 %v2189_v8, %v2187_v42 }
 0x299   : > { %v2191_v55 = vpop.eup %2190  ;;  %2202 = vpow2.f32 %v1048_v18  ;;  %1493 = vmatprep.mubr.bf16.mxu1 %v1306_v17 }
 0x29a   : > { %v2193_v27 = vpop.eup %2192  ;;  %2204 = vpow2.f32 %v1050_v0  ;;  %1124 = vadd.xlane.f32.xlu1 %v1123_v52  ;;  %1494 = vmatmul.mubr.bf16.gmra.mrb[8].mxu1 %v1305_v63  ;;  %v953_v28 = vpop.permute.xlu1 %952 }
 0x29b   : > { %v1000_v57 = vsub.f32 %v2680_v7, %v953_v28  ;;  %v1001_v58 = vsub.f32 %v2684_v10, %v953_v28  ;;  %v1126_v22 = vadd.f32 %v2193_v27, %v2191_v55 }
 0x29c   : > { %v958_v24 = vpop.permute.xlu0 %957 }
 0x29d   : > { %v2195_v9 = vpop.eup %2194  ;;  %v1052_v11 = vmul.f32 1.442695, %v1000_v57  ;;  %v1054_v30 = vmul.f32 1.442695, %v1001_v58  ;;  %v1002_v32 = vsub.f32 %v2690_v15, %v958_v24  ;;  %v1003_v62 = vsub.f32 %v2694_v16, %v958_v24  ;;  %1127 = vadd.xlane.f32.xlu0 %v1126_v22 }
 0x29e   : > { %v2197_v45 = vpop.eup %2196  ;;  %v1307_v37 = vpack.c.bf16 %v2195_v9, %v2191_v55 }
 0x29f   : > { %2206 = vpow2.f32 %v1052_v11  ;;  %v1056_v13 = vmul.f32 1.442695, %v1002_v32  ;;  %v1058_v39 = vmul.f32 1.442695, %v1003_v62  ;;  %v1308_v56 = vpack.c.bf16 %v2197_v45, %v2193_v27 }
 0x2a0   : > { %2208 = vpow2.f32 %v1054_v30  ;;  %v1129_v7 = vadd.f32 %v2197_v45, %v2195_v9  ;;  %v3131_v9 = vld [vmem:[#allocation12_spill] sm:$0xff] }
 0x2a1   : > { %v2199_v14 = vpop.eup %2198  ;;  %2210 = vpow2.f32 %v1056_v13  ;;  %1501 = vmatprep.mubr.bf16.mxu1 %v1308_v56 }
 0x2a2   : > { %v2201_v10 = vpop.eup %2200  ;;  %2212 = vpow2.f32 %v1058_v39  ;;  %1130 = vadd.xlane.f32.xlu1 %v1129_v7  ;;  %1502 = vmatmul.mubr.bf16.gmra.mrb[12].mxu1 %v1307_v37  ;;  %v963_v50 = vpop.permute.xlu1 %962 }
 0x2a3   : > { %v2203_v15 = vpop.eup %2202  ;;  %v1004_v16 = vsub.f32 %v2700_v29, %v963_v50  ;;  %v1005_v3 = vsub.f32 %v2704_v31, %v963_v50  ;;  %v1132_v59 = vadd.f32 %v2201_v10, %v2199_v14 }
 0x2a4   : > { %v2205_v41 = vpop.eup %2204  ;;  %v968_v42 = vpop.permute.xlu0 %967  ;;  %v1309_v29 = vpack.c.bf16 %v2203_v15, %v2199_v14 }
 0x2a5   : > { %v1060_v61 = vmul.f32 1.442695, %v1004_v16  ;;  %v1062_v23 = vmul.f32 1.442695, %v1005_v3  ;;  %v1006_v4 = vsub.f32 %v2710_v33, %v968_v42  ;;  %v1007_v25 = vsub.f32 %v2714_v34, %v968_v42  ;;  %1133 = vadd.xlane.f32.xlu0 %v1132_v59 }
 0x2a6   : > { %v1135_v8 = vadd.f32 %v2205_v41, %v2203_v15  ;;  %v1310_v63 = vpack.c.bf16 %v2205_v41, %v2201_v10 }
 0x2a7   : > { %2214 = vpow2.f32 %v1060_v61  ;;  %v1064_v18 = vmul.f32 1.442695, %v1006_v4  ;;  %v1066_v0 = vmul.f32 1.442695, %v1007_v25  ;;  %v896_v61 = vmul.f32 1.442695, %v866_v44 }
 0x2a8   : > { %2216 = vpow2.f32 %v1062_v23  ;;  %1136 = vadd.xlane.f32.xlu1 %v1135_v8  ;;  %1509 = vmatprep.mubr.bf16.mxu1 %v1310_v63  ;;  %v898_v23 = vmul.f32 1.442695, %v867_v51 }
 0x2a9   : > { %v2207_v31 = vpop.eup %2206  ;;  %2218 = vpow2.f32 %v1064_v18 }
 0x2aa   : > { %v2209_v17 = vpop.eup %2208  ;;  %2220 = vpow2.f32 %v1066_v0  ;;  %1510 = vmatmul.mubr.bf16.gmra.mrb[16].mxu1 %v1309_v29  ;;  %v973_v52 = vpop.permute.xlu1 %972 }
 0x2ab   : > { %v2211_v55 = vpop.eup %2210  ;;  %v1008_v33 = vsub.f32 %v2720_v47, %v973_v52  ;;  %v1009_v34 = vsub.f32 %v2724_v49, %v973_v52  ;;  %v1138_v27 = vadd.f32 %v2209_v17, %v2207_v31  ;;  %v1076_v52 = vld [vmem:[#allocation3] sm:$0xff] }
 0x2ac   : > { %v2213_v28 = vpop.eup %2212  ;;  %v978_v57 = vpop.permute.xlu0 %977  ;;  %v1311_v47 = vpack.c.bf16 %v2211_v55, %v2207_v31 }
 0x2ad   : > { %v1068_v58 = vmul.f32 1.442695, %v1008_v33  ;;  %v1070_v22 = vmul.f32 1.442695, %v1009_v34  ;;  %v1010_v24 = vsub.f32 %v2730_v53, %v978_v57  ;;  %v1011_v11 = vsub.f32 %v3131_v9, %v978_v57  ;;  %1139 = vadd.xlane.f32.xlu0 %v1138_v27 }
 0x2ae   : > { %v1141_v30 = vadd.f32 %v2213_v28, %v2211_v55  ;;  %v1312_v32 = vpack.c.bf16 %v2213_v28, %v2209_v17  ;;  %v2995_v8 = vpop.permute.xlu1 %1212  ;;  %v1092_v55 = vmul.f32 %v2905_v6, %v1076_v52  ;;  %v1077_v28 = vld [vmem:[#allocation3 + $0x8] sm:$0xff]  ;;  %v1087_v52 = vld [vmem:[#allocation3 + $0x58] sm:$0xff] }
 0x2af   : > { %2222 = vpow2.f32 %v1068_v58  ;;  %v1072_v62 = vmul.f32 1.442695, %v1010_v24  ;;  %v1074_v45 = vmul.f32 1.442695, %v1011_v11  ;;  %v1093_v57 = vmul.f32 %v2900_v12, %v1077_v28 }
 0x2b0   : > { %2224 = vpow2.f32 %v1070_v22  ;;  %1142 = vadd.xlane.f32.xlu1 %v1141_v30  ;;  %1517 = vmatprep.mubr.bf16.mxu1 %v1312_v32  ;;  %v2997_v63 = vpop.permute.xlu0 %1207  ;;  %v1078_v22 = vld [vmem:[#allocation3 + $0x10] sm:$0xff]  ;;  %v1079_v30 = vld [vmem:[#allocation3 + $0x18] sm:$0xff] }
 0x2b1   : > { %v2215_v49 = vpop.eup %2214  ;;  %2226 = vpow2.f32 %v1072_v62  ;;  %v1094_v9 = vmul.f32 %v2910_v20, %v1078_v22  ;;  %v1095_v6 = vmul.f32 %v2915_v21, %v1079_v30  ;;  %v1080_v62 = vld [vmem:[#allocation3 + $0x20] sm:$0xff]  ;;  %v1090_v30 = vld [vmem:[#allocation3 + $0x70] sm:$0xff] }
 0x2b2   : > { %v2217_v37 = vpop.eup %2216  ;;  %2228 = vpow2.f32 %v1074_v45  ;;  %1518 = vmatmul.mubr.bf16.gmra.mrb[20].mxu1 %v1311_v47  ;;  %v2999_v36 = vpop.permute.xlu1 %1217 }
 0x2b3   : > { %v2219_v13 = vpop.eup %2218  ;;  %v1144_v39 = vadd.f32 %v2217_v37, %v2215_v49  ;;  %2230 = vpow2.f32 %v896_v61 }
 0x2b4   : > { %v2221_v53 = vpop.eup %2220  ;;  %v1313_v14 = vpack.c.bf16 %v2219_v13, %v2215_v49  ;;  %2232 = vpow2.f32 %v898_v23  ;;  %v3001_v40 = vpop.permute.xlu0 %1222  ;;  %v1096_v49 = vmul.f32 %v2920_v35, %v1080_v62  ;;  %v1086_v23 = vld [vmem:[#allocation3 + $0x50] sm:$0xff] }
 0x2b5   : > { %1145 = vadd.xlane.f32.xlu0 %v1144_v39  ;;  %v1147_v56 = vadd.f32 %v2221_v53, %v2219_v13  ;;  %v1314_v7 = vpack.c.bf16 %v2221_v53, %v2217_v37  ;;  %v1081_v13 = vld [vmem:[#allocation3 + $0x28] sm:$0xff]  ;;  %v1082_v39 = vld [vmem:[#allocation3 + $0x30] sm:$0xff] }
 0x2b6   : > { %v3003_v5 = vpop.permute.xlu1 %1227  ;;  %v1097_v20 = vmul.f32 %v2924_v43, %v1081_v13  ;;  %v1085_v43 = vld [vmem:[#allocation3 + $0x48] sm:$0xff] }
 0x2b7   : > { %1148 = vadd.xlane.f32.xlu1 %v1147_v56  ;;  %1525 = vmatprep.mubr.bf16.mxu1 %v1314_v7  ;;  %v1098_v7 = vmul.f32 %v2927_v1, %v1082_v39  ;;  %v1101_v1 = vmul.f32 %v2936_v54, %v1085_v43  ;;  %v1089_v54 = vld [vmem:[#allocation3 + $0x68] sm:$0xff] }
 0x2b8   : > { %v3005_v44 = vpop.permute.xlu0 %1232 }
 0x2b9   : > { %v2223_v10 = vpop.eup %2222 }
 0x2ba   : > { %v2225_v50 = vpop.eup %2224  ;;  %1526 = vmatmul.mubr.bf16.gmra.mrb[24].mxu1 %v1313_v14  ;;  %v3007_v60 = vpop.permute.xlu1 %1237 }
 0x2bb   : > { %v2227_v15 = vpop.eup %2226  ;;  %v1150_v16 = vadd.f32 %v2225_v50, %v2223_v10 }
 0x2bc   : > { %v2229_v3 = vpop.eup %2228  ;;  %v1315_v42 = vpack.c.bf16 %v2227_v15, %v2223_v10  ;;  %v3009_v51 = vpop.permute.xlu0 %1242  ;;  %v1083_v10 = vld [vmem:[#allocation3 + $0x38] sm:$0xff] }
 0x2bd   : > { %1151 = vadd.xlane.f32.xlu0 %v1150_v16  ;;  %v1153_v59 = vadd.f32 %v2229_v3, %v2227_v15  ;;  %v1316_v41 = vpack.c.bf16 %v2229_v3, %v2225_v50  ;;  %v2989_v4 = vpop.eup %2230  ;;  %v1099_v35 = vmul.f32 %v2930_v48, %v1083_v10  ;;  %v1084_v50 = vld [vmem:[#allocation3 + $0x40] sm:$0xff]  ;;  %v1102_v48 = vmul.f32 %v2939_v46, %v1086_v23  ;;  %v1192_v10 = vld [vmem:[#allocation4 + $0x18] sm:$0xff] }
 0x2be   : > { %v2992_v25 = vpop.eup %2232  ;;  %v3011_v18 = vpop.permute.xlu1 %1247  ;;  %v1100_v3 = vmul.f32 %v2933_v38, %v1084_v50  ;;  %v1103_v38 = vmul.f32 %v2942_v19, %v1087_v52  ;;  %v1091_v19 = vld [vmem:[#allocation3 + $0x78] sm:$0xff] }
 0x2bf   : > { %1154 = vadd.xlane.f32.xlu1 %v1153_v59  ;;  %1533 = vmatprep.mubr.bf16.mxu1 %v1316_v41 }
 0x2c0   : > { %v3013_v0 = vpop.permute.xlu0 %1252 }
 0x2c2   : > { %1534 = vmatmul.mubr.bf16.gmra.mrb[28].mxu1 %v1315_v42  ;;  %v3015_v29 = vpop.permute.xlu1 %1257 }
 0x2c4   : > { %v3017_v31 = vpop.permute.xlu0 %1262 }
 0x2c6   : > { %v3019_v17 = vpop.permute.xlu1 %1267 }
 0x2c8   : > { %v3022_v34 = vpop.permute.xlu0 %1272 }
 0x2d0   : > { %1277 = vperm.xlu1 %2089, %v2989_v4  }
 0x2d3   : > { %1282 = vperm.xlu0 %2088, %v2992_v25  }
 0x312   : > { %v1110_v33 = vpop.xlane.xlu1 %1109 }
 0x313   : > { %v1156_v27 = vadd.f32 %v1110_v33, %v1092_v55 }
 0x315   : > { %1173 = vst.msk [vmem:[#allocation3] sm:$0xff] %vm1172_vm3, %v1156_v27 }
 0x317   : > { %v1113_v58 = vpop.xlane.xlu0 %1112 }
 0x318   : > { %v1157_v24 = vadd.f32 %v1113_v58, %v1093_v57  ;;  %v1088_v57 = vld [vmem:[#allocation3 + $0x60] sm:$0xff] }
 0x319   : > { %v1104_v58 = vmul.f32 %v2945_v26, %v1088_v57  ;;  %v1196_v57 = vld [vmem:[#allocation4 + $0x38] sm:$0xff] }
 0x31a   : > { %1174 = vst.msk [vmem:[#allocation3 + $0x8] sm:$0xff] %vm1172_vm3, %v1157_v24 }
 0x31b   : > { %v1116_v11 = vpop.xlane.xlu0 %1115 }
 0x31c   : > { %v1158_v32 = vadd.f32 %v1116_v11, %v1094_v9  ;;  %v1105_v9 = vmul.f32 %v2948_v2, %v1089_v54  ;;  %v1189_v2 = vld [vmem:[#allocation4] sm:$0xff] }
 0x31d   : > { %v1285_v13 = vmul.f32 %v2997_v63, %v1189_v2  ;;  %v1288_v63 = vmul.f32 %v3001_v40, %v1192_v10  ;;  %v1202_v10 = vld [vmem:[#allocation4 + $0x68] sm:$0xff] }
 0x31e   : > { %1175 = vst.msk [vmem:[#allocation3 + $0x10] sm:$0xff] %vm1172_vm3, %v1158_v32  ;;  %v1106_v32 = vmul.f32 %v2989_v4, %v1090_v30  ;;  %v1197_v30 = vld [vmem:[#allocation4 + $0x40] sm:$0xff] }
 0x31f   : > { %v1119_v45 = vpop.xlane.xlu1 %1118 }
 0x320   : > { %v1159_v47 = vadd.f32 %v1119_v45, %v1095_v6  ;;  %v1107_v45 = vmul.f32 %v2992_v25, %v1091_v19 }
 0x322   : > { %1176 = vst.msk [vmem:[#allocation3 + $0x18] sm:$0xff] %vm1172_vm3, %v1159_v47  ;;  %v1122_v12 = vpop.xlane.xlu0 %1121 }
 0x323   : > { %v1160_v37 = vadd.f32 %v1122_v12, %v1096_v49  ;;  %v1190_v12 = vld [vmem:[#allocation4 + $0x8] sm:$0xff] }
 0x324   : > { %v1286_v4 = vmul.f32 %v2995_v8, %v1190_v12  ;;  %v1199_v12 = vld [vmem:[#allocation4 + $0x50] sm:$0xff] }
 0x325   : > { %1177 = vst.msk [vmem:[#allocation3 + $0x20] sm:$0xff] %vm1172_vm3, %v1160_v37 }
 0x327   : > { %v1125_v53 = vpop.xlane.xlu1 %1124 }
 0x328   : > { %v1161_v56 = vadd.f32 %v1125_v53, %v1097_v20 }
 0x32a   : > { %1178 = vst.msk [vmem:[#allocation3 + $0x28] sm:$0xff] %vm1172_vm3, %v1161_v56  ;;  %v1128_v21 = vpop.xlane.xlu0 %1127 }
 0x32b   : > { %v1162_v14 = vadd.f32 %v1128_v21, %v1098_v7  ;;  %v1191_v21 = vld [vmem:[#allocation4 + $0x10] sm:$0xff] }
 0x32c   : > { %v1287_v50 = vmul.f32 %v2999_v36, %v1191_v21  ;;  %v1201_v21 = vld [vmem:[#allocation4 + $0x60] sm:$0xff] }
 0x32d   : > { %1179 = vst.msk [vmem:[#allocation3 + $0x30] sm:$0xff] %vm1172_vm3, %v1162_v14 }
 0x32f   : > { %v1131_v15 = vpop.xlane.xlu1 %1130 }
 0x330   : > { %v1163_v16 = vadd.f32 %v1131_v15, %v1099_v35 }
 0x332   : > { %1180 = vst.msk [vmem:[#allocation3 + $0x38] sm:$0xff] %vm1172_vm3, %v1163_v16  ;;  %v1134_v59 = vpop.xlane.xlu0 %1133 }
 0x333   : > { %v1164_v41 = vadd.f32 %v1134_v59, %v1100_v3 }
 0x335   : > { %1181 = vst.msk [vmem:[#allocation3 + $0x40] sm:$0xff] %vm1172_vm3, %v1164_v41  ;;  %v1137_v42 = vpop.xlane.xlu1 %1136  ;;  %v1193_v41 = vld [vmem:[#allocation4 + $0x20] sm:$0xff] }
 0x336   : > { %v1165_v61 = vadd.f32 %v1137_v42, %v1101_v1  ;;  %v1194_v42 = vld [vmem:[#allocation4 + $0x28] sm:$0xff]  ;;  %v1289_v23 = vmul.f32 %v3003_v5, %v1193_v41  ;;  %v1292_v5 = vmul.f32 %v3009_v51, %v1196_v57 }
 0x337   : > { %v1290_v36 = vmul.f32 %v3005_v44, %v1194_v42 }
 0x338   : > { %1182 = vst.msk [vmem:[#allocation3 + $0x48] sm:$0xff] %vm1172_vm3, %v1165_v61 }
 0x33a   : > { %v1140_v55 = vpop.xlane.xlu0 %1139 }
 0x33b   : > { %v1166_v33 = vadd.f32 %v1140_v55, %v1102_v48 }
 0x33d   : > { %1183 = vst.msk [vmem:[#allocation3 + $0x50] sm:$0xff] %vm1172_vm3, %v1166_v33  ;;  %v1143_v27 = vpop.xlane.xlu1 %1142 }
 0x33e   : > { %v1167_v28 = vadd.f32 %v1143_v27, %v1103_v38  ;;  %v1195_v27 = vld [vmem:[#allocation4 + $0x30] sm:$0xff] }
 0x340   : > { %1184 = vst.msk [vmem:[#allocation3 + $0x58] sm:$0xff] %vm1172_vm3, %v1167_v28 }
 0x342   : > { %v1146_v22 = vpop.xlane.xlu0 %1145 }
 0x343   : > { %v1168_v24 = vadd.f32 %v1146_v22, %v1104_v58  ;;  %v1291_v58 = vmul.f32 %v3007_v60, %v1195_v27 }
 0x344   : > { %v1149_v46 = vpop.xlane.xlu1 %1148 }
 0x345   : > { %1185 = vst.msk [vmem:[#allocation3 + $0x60] sm:$0xff] %vm1172_vm3, %v1168_v24  ;;  %v1169_v11 = vadd.f32 %v1149_v46, %v1105_v9 }
 0x347   : > { %1186 = vst.msk [vmem:[#allocation3 + $0x68] sm:$0xff] %vm1172_vm3, %v1169_v11 }
 0x34a   : > { %v1152_v6 = vpop.xlane.xlu0 %1151 }
 0x34b   : > { %v1170_v62 = vadd.f32 %v1152_v6, %v1106_v32  ;;  %v1198_v32 = vld [vmem:[#allocation4 + $0x48] sm:$0xff] }
 0x34c   : > { %v1155_v47 = vpop.xlane.xlu1 %1154  ;;  %v1294_v60 = vmul.f32 %v3013_v0, %v1198_v32 }
 0x34d   : > { %1187 = vst.msk [vmem:[#allocation3 + $0x70] sm:$0xff] %vm1172_vm3, %v1170_v62  ;;  %v1171_v26 = vadd.f32 %v1155_v47, %v1107_v45  ;;  %v1293_v62 = vmul.f32 %v3011_v18, %v1197_v30 }
 0x34f   : > { %1188 = vst.msk [vmem:[#allocation3 + $0x78] sm:$0xff] %vm1172_vm3, %v1171_v26 }
 0x352   : > { %v1283_v42 = vpop.permute.xlu0 %1282 }
 0x35d   : > { %v1961_v49 = vpop.f32.mrb[0].mxu1 }
 0x35e   : > { %v1962_v37 = vpop.f32.mrb[1].mxu1 }
 0x35f   : > { %v1963_v20 = vadd.f32 %v1962_v37, %v1961_v49  ;;  %v1964_v39 = vpop.f32.mrb[2].mxu1 }
 0x360   : > { %v1965_v53 = vpop.f32.mrb[3].mxu1 }
 0x361   : > { %v1542_v56 = vadd.f32 %v1963_v20, %v1285_v13  ;;  %v1966_v7 = vadd.f32 %v1965_v53, %v1964_v39  ;;  %v1200_v13 = vld [vmem:[#allocation4 + $0x58] sm:$0xff]  ;;  %v1295_v39 = vmul.f32 %v3015_v29, %v1199_v12  ;;  %v1298_v29 = vmul.f32 %v3022_v34, %v1202_v10 }
 0x362   : > { %v1296_v18 = vmul.f32 %v3017_v31, %v1200_v13 }
 0x363   : > { %1558 = vst [vmem:[#allocation4] sm:$0xff] %v1542_v56  ;;  %v1543_v25 = vadd.f32 %v1966_v7, %v1286_v4 }
 0x365   : > { %1559 = vst [vmem:[#allocation4 + $0x8] sm:$0xff] %v1543_v25  ;;  %v1967_v14 = vpop.f32.mrb[4].mxu1 }
 0x366   : > { %v1968_v35 = vpop.f32.mrb[5].mxu1 }
 0x367   : > { %v1969_v15 = vadd.f32 %v1968_v35, %v1967_v14  ;;  %v1970_v16 = vpop.f32.mrb[6].mxu1 }
 0x368   : > { %v1971_v3 = vpop.f32.mrb[7].mxu1 }
 0x369   : > { %v1544_v43 = vadd.f32 %v1969_v15, %v1287_v50  ;;  %v1972_v59 = vadd.f32 %v1971_v3, %v1970_v16  ;;  %v1297_v50 = vmul.f32 %v3019_v17, %v1201_v21 }
 0x36b   : > { %1560 = vst [vmem:[#allocation4 + $0x10] sm:$0xff] %v1544_v43  ;;  %v1545_v8 = vadd.f32 %v1972_v59, %v1288_v63  ;;  %v1203_v59 = vld [vmem:[#allocation4 + $0x70] sm:$0xff] }
 0x36d   : > { %1561 = vst [vmem:[#allocation4 + $0x18] sm:$0xff] %v1545_v8  ;;  %v1973_v1 = vpop.f32.mrb[8].mxu1  ;;  %v1278_v8 = vpop.permute.xlu1 %1277 }
 0x36e   : > { %v1974_v61 = vpop.f32.mrb[9].mxu1 }
 0x36f   : > { %v1975_v48 = vadd.f32 %v1974_v61, %v1973_v1  ;;  %v1976_v52 = vpop.f32.mrb[10].mxu1  ;;  %v1204_v1 = vld [vmem:[#allocation4 + $0x78] sm:$0xff] }
 0x370   : > { %v1977_v55 = vpop.f32.mrb[11].mxu1 }
 0x371   : > { %v1546_v33 = vadd.f32 %v1975_v48, %v1289_v23  ;;  %v1978_v38 = vadd.f32 %v1977_v55, %v1976_v52  ;;  %v1299_v23 = vmul.f32 %v1278_v8, %v1203_v59  ;;  %v1300_v55 = vmul.f32 %v1283_v42, %v1204_v1 }
 0x373   : > { %1562 = vst [vmem:[#allocation4 + $0x20] sm:$0xff] %v1546_v33  ;;  %v1547_v40 = vadd.f32 %v1978_v38, %v1290_v36 }
 0x375   : > { %1563 = vst [vmem:[#allocation4 + $0x28] sm:$0xff] %v1547_v40  ;;  %v1979_v28 = vpop.f32.mrb[12].mxu1 }
 0x376   : > { %v1980_v54 = vpop.f32.mrb[13].mxu1 }
 0x377   : > { %v1981_v22 = vadd.f32 %v1980_v54, %v1979_v28  ;;  %v1982_v24 = vpop.f32.mrb[14].mxu1 }
 0x378   : > { %v1983_v9 = vpop.f32.mrb[15].mxu1 }
 0x379   : > { %v1548_v46 = vadd.f32 %v1981_v22, %v1291_v58  ;;  %v1984_v11 = vadd.f32 %v1983_v9, %v1982_v24 }
 0x37b   : > { %1564 = vst [vmem:[#allocation4 + $0x30] sm:$0xff] %v1548_v46  ;;  %v1549_v44 = vadd.f32 %v1984_v11, %v1292_v5 }
 0x37d   : > { %1565 = vst [vmem:[#allocation4 + $0x38] sm:$0xff] %v1549_v44  ;;  %v1985_v19 = vpop.f32.mrb[16].mxu1 }
 0x37e   : > { %v1986_v6 = vpop.f32.mrb[17].mxu1 }
 0x37f   : > { %v1987_v45 = vadd.f32 %v1986_v6, %v1985_v19  ;;  %v1988_v47 = vpop.f32.mrb[18].mxu1 }
 0x380   : > { %v1989_v26 = vpop.f32.mrb[19].mxu1 }
 0x381   : > { %v1550_v2 = vadd.f32 %v1987_v45, %v1293_v62  ;;  %v1990_v49 = vadd.f32 %v1989_v26, %v1988_v47 }
 0x383   : > { %1566 = vst [vmem:[#allocation4 + $0x40] sm:$0xff] %v1550_v2  ;;  %v1551_v51 = vadd.f32 %v1990_v49, %v1294_v60 }
 0x385   : > { %1567 = vst [vmem:[#allocation4 + $0x48] sm:$0xff] %v1551_v51  ;;  %v1991_v37 = vpop.f32.mrb[20].mxu1 }
 0x386   : > { %v1992_v20 = vpop.f32.mrb[21].mxu1 }
 0x387   : > { %v1993_v53 = vadd.f32 %v1992_v20, %v1991_v37  ;;  %v1994_v4 = vpop.f32.mrb[22].mxu1 }
 0x388   : > { %v1995_v56 = vpop.f32.mrb[23].mxu1 }
 0x389   : > { %v1552_v7 = vadd.f32 %v1993_v53, %v1295_v39  ;;  %v1996_v25 = vadd.f32 %v1995_v56, %v1994_v4 }
 0x38b   : > { %1568 = vst [vmem:[#allocation4 + $0x50] sm:$0xff] %v1552_v7  ;;  %v1553_v0 = vadd.f32 %v1996_v25, %v1296_v18 }
 0x38d   : > { %1569 = vst [vmem:[#allocation4 + $0x58] sm:$0xff] %v1553_v0  ;;  %v1997_v14 = vpop.f32.mrb[24].mxu1 }
 0x38e   : > { %v1998_v35 = vpop.f32.mrb[25].mxu1 }
 0x38f   : > { %v1999_v15 = vadd.f32 %v1998_v35, %v1997_v14  ;;  %v2000_v16 = vpop.f32.mrb[26].mxu1 }
 0x390   : > { %v2001_v3 = vpop.f32.mrb[27].mxu1 }
 0x391   : > { %v1554_v63 = vadd.f32 %v1999_v15, %v1297_v50  ;;  %v2002_v43 = vadd.f32 %v2001_v3, %v2000_v16 }
 0x393   : > { %1570 = vst [vmem:[#allocation4 + $0x60] sm:$0xff] %v1554_v63  ;;  %v1555_v31 = vadd.f32 %v2002_v43, %v1298_v29 }
 0x395   : > { %1571 = vst [vmem:[#allocation4 + $0x68] sm:$0xff] %v1555_v31  ;;  %v2003_v41 = vpop.f32.mrb[28].mxu1 }
 0x396   : > { %v2004_v61 = vpop.f32.mrb[29].mxu1 }
 0x397   : > { %v2005_v48 = vadd.f32 %v2004_v61, %v2003_v41  ;;  %v2006_v52 = vpop.f32.mrb[30].mxu1 }
 0x398   : > { %v2007_v17 = vpop.f32.mrb[31].mxu1 }
 0x399   : > { %v1556_v36 = vadd.f32 %v2005_v48, %v1299_v23  ;;  %v2008_v33 = vadd.f32 %v2007_v17, %v2006_v52 }
 0x39b   : > { %1572 = vst [vmem:[#allocation4 + $0x70] sm:$0xff] %v1556_v36  ;;  %v1557_v34 = vadd.f32 %v2008_v33, %v1300_v55 }
 0x39d   : > { %1573 = vst [vmem:[#allocation4 + $0x78] sm:$0xff] %v1557_v34 }
 0x39e PF: > { %p1942_p7 = scmp.ne.s32.totalorder %s2328_s22, 2 }
 0x39f   : > { %v1612_v38 = vld [vmem:[#allocation3 + $0x10] sm:$0xff] (!%p1942_p7)  ;;  %v1610_v40 = vld [vmem:[#allocation3] sm:$0xff] (!%p1942_p7)  ;;  %v1613_v27 = vld [vmem:[#allocation3 + $0x18] sm:$0xff] (!%p1942_p7)  ;;  %v2358_v28 = vmov (!%p1942_p7), 0  }
 0x3a0   : > { %1593 = sbr.rel (%p1942_p7) target bundleno = 1099 (0x44b), region = 82  ;;  %2235 = vset.pattern.permute.xlu1 (!%p1942_p7), %v2358_v28  ;;  %2234 = vset.pattern.permute.xlu0 (!%p1942_p7), %v2358_v28  ;;  %2236 = vrcp.f32 (!%p1942_p7), %v1612_v38  ;;  %v1611_v57 = vld [vmem:[#allocation3 + $0x8] sm:$0xff] (!%p1942_p7)  ;;  %v1614_v58 = vld [vmem:[#allocation3 + $0x20] sm:$0xff] (!%p1942_p7)  ;;  %v1617_v22 = vld [vmem:[#allocation3 + $0x38] sm:$0xff] (!%p1942_p7) }
 0x3a1   : > { %2238 = vrcp.f32 (!%p1942_p7), %v1610_v40  ;;  %v1615_v54 = vld [vmem:[#allocation3 + $0x28] sm:$0xff] (!%p1942_p7)  ;;  %v1616_v24 = vld [vmem:[#allocation3 + $0x30] sm:$0xff] (!%p1942_p7)  ;;  %v1618_v44 = vld [vmem:[#allocation3 + $0x40] sm:$0xff] (!%p1942_p7) }
 0x3a2   : > { %2240 = vrcp.f32 (!%p1942_p7), %v1613_v27  ;;  %v1619_v46 = vld [vmem:[#allocation3 + $0x48] sm:$0xff] (!%p1942_p7)  ;;  %v1621_v19 = vld [vmem:[#allocation3 + $0x58] sm:$0xff] (!%p1942_p7)  ;;  %v1620_v6 = vld [vmem:[#allocation3 + $0x50] sm:$0xff] (!%p1942_p7) }
 0x3a3   : > { %2242 = vrcp.f32 (!%p1942_p7), %v1611_v57  ;;  %v1623_v45 = vld [vmem:[#allocation3 + $0x68] sm:$0xff] (!%p1942_p7)  ;;  %v1622_v26 = vld [vmem:[#allocation3 + $0x60] sm:$0xff] (!%p1942_p7)  ;;  %v1625_v2 = vld [vmem:[#allocation3 + $0x78] sm:$0xff] (!%p1942_p7) }
 0x3a4   : > { %2244 = vrcp.f32 (!%p1942_p7), %v1615_v54  ;;  %v1624_v51 = vld [vmem:[#allocation3 + $0x70] sm:$0xff] (!%p1942_p7)  ;;  %v1594_v18 = vld [vmem:[#allocation4] sm:$0xff] (!%p1942_p7)  ;;  %v1597_v14 = vld [vmem:[#allocation4 + $0x18] sm:$0xff] (!%p1942_p7) }
 0x3a5   : > { %2246 = vrcp.f32 (!%p1942_p7), %v1614_v58  ;;  %v1596_v56 = vld [vmem:[#allocation4 + $0x10] sm:$0xff] (!%p1942_p7)  ;;  %v1595_v10 = vld [vmem:[#allocation4 + $0x8] sm:$0xff] (!%p1942_p7)  ;;  %v1598_v29 = vld [vmem:[#allocation4 + $0x20] sm:$0xff] (!%p1942_p7) }
 0x3a6   : > { %2248 = vrcp.f32 (!%p1942_p7), %v1617_v22  ;;  %v1599_v3 = vld [vmem:[#allocation4 + $0x28] sm:$0xff] (!%p1942_p7)  ;;  %v1601_v8 = vld [vmem:[#allocation4 + $0x38] sm:$0xff] (!%p1942_p7)  ;;  %v1600_v41 = vld [vmem:[#allocation4 + $0x30] sm:$0xff] (!%p1942_p7) }
 0x3a7   : > { %2250 = vrcp.f32 %v1616_v24  ;;  %v1603_v48 = vld [vmem:[#allocation4 + $0x48] sm:$0xff]  ;;  %v1602_v52 = vld [vmem:[#allocation4 + $0x40] sm:$0xff]  ;;  %v1605_v34 = vld [vmem:[#allocation4 + $0x58] sm:$0xff] }
 0x3a8   : > { %2252 = vrcp.f32 %v1619_v46  ;;  %v1604_v38 = vld [vmem:[#allocation4 + $0x50] sm:$0xff]  ;;  %v1607_v54 = vld [vmem:[#allocation4 + $0x68] sm:$0xff]  ;;  %v1606_v58 = vld [vmem:[#allocation4 + $0x60] sm:$0xff] }
 0x3a9   : > { %2254 = vrcp.f32 %v1618_v44  ;;  %v1609_v46 = vld [vmem:[#allocation4 + $0x78] sm:$0xff] }
 0x3aa   : > { %v2237_v9 = vpop.eup %2236  ;;  %2256 = vrcp.f32 %v1621_v19 }
 0x3ab   : > { %v2239_v5 = vpop.eup %2238  ;;  %1654 = vperm.xlu1 %2235, %v2237_v9   ;;  %2258 = vrcp.f32 %v1620_v6 }
 0x3ac   : > { %v2241_v11 = vpop.eup %2240  ;;  %1644 = vperm.xlu0 %2234, %v2239_v5   ;;  %2260 = vrcp.f32 %v1623_v45 }
 0x3ad   : > { %v2243_v30 = vpop.eup %2242  ;;  %2262 = vrcp.f32 %v1622_v26 }
 0x3ae   : > { %v2245_v32 = vpop.eup %2244  ;;  %2264 = vrcp.f32 %v1625_v2 }
 0x3af   : > { %1659 = vperm.xlu1 %2235, %v2241_v11   ;;  %v2247_v62 = vpop.eup %2246  ;;  %2266 = vrcp.f32 %v1624_v51  ;;  %v1608_v11 = vld [vmem:[#allocation4 + $0x70] sm:$0xff] }
 0x3b0   : > { %1649 = vperm.xlu0 %2234, %v2243_v30   ;;  %v2249_v47 = vpop.eup %2248 }
 0x3b1   : > { %v2251_v60 = vpop.eup %2250 }
 0x3b2   : > { %v2253_v49 = vpop.eup %2252 }
 0x3b3   : > { %1669 = vperm.xlu1 %2235, %v2245_v32   ;;  %v2255_v12 = vpop.eup %2254 }
 0x3b4   : > { %1664 = vperm.xlu0 %2234, %v2247_v62   ;;  %v2257_v37 = vpop.eup %2256 }
 0x3b5   : > { %v2259_v13 = vpop.eup %2258 }
 0x3b6   : > { %v2261_v20 = vpop.eup %2260 }
 0x3b7   : > { %1679 = vperm.xlu1 %2235, %v2249_v47   ;;  %v2263_v39 = vpop.eup %2262 }
 0x3b8   : > { %1674 = vperm.xlu0 %2234, %v2251_v60   ;;  %v2265_v53 = vpop.eup %2264 }
 0x3b9   : > { %v2267_v4 = vpop.eup %2266 }
 0x3bb   : > { %1689 = vperm.xlu1 %2235, %v2253_v49  }
 0x3bc   : > { %1684 = vperm.xlu0 %2234, %v2255_v12  }
 0x3bf   : > { %1699 = vperm.xlu1 %2235, %v2257_v37  }
 0x3c0   : > { %1694 = vperm.xlu0 %2234, %v2259_v13  }
 0x3c3   : > { %1709 = vperm.xlu1 %2235, %v2261_v20  }
 0x3c4   : > { %1704 = vperm.xlu0 %2234, %v2263_v39  }
 0x3c7   : > { %1719 = vperm.xlu1 %2235, %v2265_v53  }
 0x3c8   : > { %1714 = vperm.xlu0 %2234, %v2267_v4  }
 0x42a   : > { %v1655_v7 = vpop.permute.xlu1 %1654 }
 0x42b   : > { %v1724_v25 = vmul.f32 %v1655_v7, %v1596_v56  ;;  %v1645_v0 = vpop.permute.xlu0 %1644 }
 0x42c   : > { %v1722_v21 = vmul.f32 %v1645_v0, %v1594_v18 }
 0x42d   : > { %1740 = vst [vmem:[%s2497_s2 + $0x10] sm:$0xff] %v1724_v25 }
 0x42e   : > { %1738 = vst [vmem:[%s2497_s2] sm:$0xff] %v1722_v21  ;;  %v1660_v35 = vpop.permute.xlu1 %1659 }
 0x42f   : > { %v1725_v50 = vmul.f32 %v1660_v35, %v1597_v14  ;;  %v1650_v15 = vpop.permute.xlu0 %1649 }
 0x430   : > { %v1723_v16 = vmul.f32 %v1650_v15, %v1595_v10 }
 0x431   : > { %1741 = vst [vmem:[%s2497_s2 + $0x18] sm:$0xff] %v1725_v50 }
 0x432   : > { %1739 = vst [vmem:[%s2497_s2 + $0x8] sm:$0xff] %v1723_v16  ;;  %v1670_v63 = vpop.permute.xlu1 %1669 }
 0x433   : > { %v1727_v43 = vmul.f32 %v1670_v63, %v1599_v3  ;;  %v1665_v31 = vpop.permute.xlu0 %1664 }
 0x434   : > { %v1726_v59 = vmul.f32 %v1665_v31, %v1598_v29 }
 0x435   : > { %1743 = vst [vmem:[%s2497_s2 + $0x28] sm:$0xff] %v1727_v43 }
 0x436   : > { %1742 = vst [vmem:[%s2497_s2 + $0x20] sm:$0xff] %v1726_v59  ;;  %v1680_v1 = vpop.permute.xlu1 %1679 }
 0x437   : > { %v1729_v42 = vmul.f32 %v1680_v1, %v1601_v8  ;;  %v1675_v61 = vpop.permute.xlu0 %1674 }
 0x438   : > { %v1728_v23 = vmul.f32 %v1675_v61, %v1600_v41 }
 0x439   : > { %1745 = vst [vmem:[%s2497_s2 + $0x38] sm:$0xff] %v1729_v42 }
 0x43a   : > { %1744 = vst [vmem:[%s2497_s2 + $0x30] sm:$0xff] %v1728_v23  ;;  %v1690_v17 = vpop.permute.xlu1 %1689 }
 0x43b   : > { %v1731_v55 = vmul.f32 %v1690_v17, %v1603_v48  ;;  %v1685_v36 = vpop.permute.xlu0 %1684 }
 0x43c   : > { %v1730_v33 = vmul.f32 %v1685_v36, %v1602_v52 }
 0x43d   : > { %1747 = vst [vmem:[%s2497_s2 + $0x48] sm:$0xff] %v1731_v55 }
 0x43e   : > { %1746 = vst [vmem:[%s2497_s2 + $0x40] sm:$0xff] %v1730_v33  ;;  %v1700_v40 = vpop.permute.xlu1 %1699 }
 0x43f   : > { %v1733_v27 = vmul.f32 %v1700_v40, %v1605_v34  ;;  %v1695_v28 = vpop.permute.xlu0 %1694 }
 0x440   : > { %v1732_v57 = vmul.f32 %v1695_v28, %v1604_v38 }
 0x441   : > { %1749 = vst [vmem:[%s2497_s2 + $0x58] sm:$0xff] %v1733_v27 }
 0x442   : > { %1748 = vst [vmem:[%s2497_s2 + $0x50] sm:$0xff] %v1732_v57  ;;  %v1710_v22 = vpop.permute.xlu1 %1709 }
 0x443   : > { %v1735_v24 = vmul.f32 %v1710_v22, %v1607_v54  ;;  %v1705_v9 = vpop.permute.xlu0 %1704 }
 0x444   : > { %v1734_v5 = vmul.f32 %v1705_v9, %v1606_v58 }
 0x445   : > { %1751 = vst [vmem:[%s2497_s2 + $0x68] sm:$0xff] %v1735_v24 }
 0x446   : > { %1750 = vst [vmem:[%s2497_s2 + $0x60] sm:$0xff] %v1734_v5  ;;  %v1720_v44 = vpop.permute.xlu1 %1719 }
 0x447   : > { %v1737_v30 = vmul.f32 %v1720_v44, %v1609_v46  ;;  %v1715_v19 = vpop.permute.xlu0 %1714 }
 0x448   : > { %v1736_v32 = vmul.f32 %v1715_v19, %v1608_v11 }
 0x449   : > { %1753 = vst [vmem:[%s2497_s2 + $0x78] sm:$0xff] %v1737_v30 }
 0x44a   : > { %1752 = vst [vmem:[%s2497_s2 + $0x70] sm:$0xff] %v1736_v32 }
 0x44b PF: > { %s20_s27 = sadd.s32 1, %s2352_s27   ;;  %s3132_s28 = sld [smem:[#allocation9_spill]] }
 0x44c   : > { %p17_p8 = scmp.ge.s32.totalorder %s20_s27, 20   ;;  %s3133_s29 = sld [smem:[#allocation10_spill]] }
 0x44d   : > { %s3134_s30 = sld [smem:[#allocation11_spill]]  ;;  %s3135_s20 = smov %s2324_s21 }
 0x44e   : > { %s3136_s21 = smov %s2452_s9  ;;  %s3137_s22 = smov %s2340_s24 }
 0x44f   : > { %s3138_s0 = smov %s2344_s25  ;;  %s3139_s23 = smov %s2348_s26 }
 0x450   :  { %19 = sbr.rel (!%p17_p8) target bundleno = 20 (0x14), region = 123 }
 0x451   : > { %s3140_s24 = smov %s3132_s28 }
 0x452   : > { %s3141_s25 = smov %s3133_s29 }
 0x453   : > { %s3142_s26 = smov %s3134_s30 }

</bundles_post_ra>
